<compile_context>
chip_gen: v5e
topology: v5e:2x2
jax: 0.10.0
libtpu: 0.0.40
codegen_flags: <defaults>
</compile_context>

<pallas_src>
import functools
import numpy as np
import jax
import jax.numpy as jnp
from jax.experimental import pallas as pl
from jax.experimental.pallas import tpu as pltpu


# ----------------------------------------------------------------------------
# Generation-aware VMEM budget (<= 48 MiB fallback / v7x, up to 96 MiB v5e/v6e)
# ----------------------------------------------------------------------------
def _pick_vmem_limit():
    try:
        cap = int(pltpu.get_tpu_info().vmem_capacity_bytes)
    except Exception:
        cap = 64 * 1024 * 1024          # conservative (v7x physical VMEM)
    return int(min(100 * 1024 * 1024, max(32 * 1024 * 1024, cap * 3 // 4)))


_VMEM_LIMIT = _pick_vmem_limit()


def _const_map(nd):
    return lambda *args: (0,) * nd


def _bucket_pow2(n, minimum=16):
    m = int(minimum)
    while m < n:
        m *= 2
    return m


def _choose_tile_m(M, T):
    """Pick a power-of-two waveforms-per-tile targeting ~2048 rows per block."""
    target = max(8, min(128, 2048 // max(T, 1)))
    tile_m = 8
    while tile_m * 2 <= target:
        tile_m *= 2
    m_pad8 = ((M + 7) // 8) * 8
    while tile_m > m_pad8:
        tile_m //= 2
    tile_m = max(8, tile_m)
    # Keep >= 2 grid steps when possible so the 'parallel' axis can feed both
    # TensorCores on v7x.
    while tile_m > 8 and ((M + tile_m - 1) // tile_m) < 2:
        tile_m //= 2
    return tile_m


@functools.lru_cache(maxsize=None)
def _encoder_constants(tile_m, t_len):
    """Hoisted grid-invariant constants: boundary masks + binary pool matrix."""
    rows = tile_m * t_len
    tpos = np.arange(rows) % t_len
    not_first = (tpos != 0).astype(np.float32).reshape(rows, 1)
    not_last = (tpos != t_len - 1).astype(np.float32).reshape(rows, 1)
    seg = np.arange(rows) // t_len
    pool = (seg[None, :] == np.arange(tile_m)[:, None]).astype(np.float32)
    return (jnp.asarray(not_first), jnp.asarray(not_last),
            jnp.asarray(pool, dtype=jnp.bfloat16))


# ============================================================================
# Fused encoder kernel: conv1(k3)+ReLU -> [BasicBlock]*n -> mean-pool -> FC.
# Operates on a tile of `tile_m` waveforms laid out as (tile_m * T, C) rows;
# tile boundaries coincide with waveform boundaries so no halo is needed.
# ============================================================================
def _encoder_kernel(x_ref, nf_ref, nl_ref, pool_ref, *refs, n_blocks, t_len):
    o_ref = refs[-1]
    wrefs = refs[:-1]
    conv1_w, conv1_b = wrefs[0], wrefs[1]
    blocks = [wrefs[2 + 4 * j: 6 + 4 * j] for j in range(n_blocks)]
    fc_w, fc_b = wrefs[2 + 4 * n_blocks], wrefs[3 + 4 * n_blocks]

    rows = x_ref.shape[0]
    nf = nf_ref[...]                       # (rows, 1) f32: 0 at waveform start
    nl = nl_ref[...]                       # (rows, 1) f32: 0 at waveform end

    x = x_ref[...].astype(jnp.float32)     # bf16 stream -> f32 on-chip

    def conv3(h, w_ref, b_ref):
        # h: (rows, cin) f32 ; w_ref: (3*cin, P) bf16 ; b_ref: (1, P) f32
        h_prev = pltpu.roll(h, shift=1, axis=0) * nf
        h_next = pltpu.roll(h, shift=rows - 1, axis=0) * nl
        h_cat = jnp.concatenate([h_prev, h, h_next],
                                axis=-1).astype(jnp.bfloat16)
        return jnp.dot(h_cat, w_ref[...],
                       preferred_element_type=jnp.float32) + b_ref[...]

    y = jnp.maximum(conv3(x, conv1_w, conv1_b), 0.0)
    for (w1, b1, w2, b2) in blocks:
        h1 = jnp.maximum(conv3(y, w1, b1), 0.0)
        h2 = conv3(h1, w2, b2)
        y = jnp.maximum(h2 + y, 0.0)

    # mean over time: binary pooling matmul (hoisted), 1/T scale in f32.
    pooled = jnp.dot(pool_ref[...], y.astype(jnp.bfloat16),
                     preferred_element_type=jnp.float32) * (1.0 / t_len)

    out = jnp.dot(pooled.astype(jnp.bfloat16), fc_w[...],
                  preferred_element_type=jnp.float32) + fc_b[...]
    o_ref[...] = out


@functools.partial(jax.jit, static_argnames=("n_blocks", "t_len", "tile_m", "h_dim"))
def _encoder_apply(x2d, nf, nl, pool, weights, n_blocks, t_len, tile_m, h_dim):
    rows_per_tile = tile_m * t_len
    total_rows, c_in = x2d.shape
    m_pad = total_rows // t_len
    grid = (m_pad // tile_m,)

    in_specs = [
        pl.BlockSpec((rows_per_tile, c_in), lambda i: (i, 0)),
        pl.BlockSpec((rows_per_tile, 1), lambda i: (0, 0)),
        pl.BlockSpec((rows_per_tile, 1), lambda i: (0, 0)),
        pl.BlockSpec((tile_m, rows_per_tile), lambda i: (0, 0)),
    ]
    for w in weights:
        in_specs.append(pl.BlockSpec(w.shape, _const_map(w.ndim)))

    return pl.pallas_call(
        functools.partial(_encoder_kernel, n_blocks=n_blocks, t_len=t_len),
        grid=grid,
        out_shape=jax.ShapeDtypeStruct((m_pad, h_dim), jnp.float32),
        in_specs=in_specs,
        out_specs=pl.BlockSpec((tile_m, h_dim), lambda i: (i, 0)),
        compiler_params=pltpu.CompilerParams(
            dimension_semantics=("parallel",),
            vmem_limit_bytes=_VMEM_LIMIT),
    )(x2d, nf, nl, pool, *weights)


# ============================================================================
# Fused 6-layer g MLP (Linear+PReLU x5, Linear), row-tiled 'parallel' grid.
# ============================================================================
def _g_mlp_kernel(x_ref, *refs):
    o_ref = refs[-1]
    slopes_ref = refs[-2]
    wb = refs[:-2]
    n_layers = len(wb) // 2

    h = x_ref[...]
    for i in range(n_layers):
        w = wb[2 * i][...]
        b = wb[2 * i + 1][...]
        h = jnp.dot(h.astype(jnp.bfloat16), w,
                    preferred_element_type=jnp.float32) + b
        if i < n_layers - 1:
            a = slopes_ref[i]
            h = jnp.where(h > 0, h, a * h)
    o_ref[...] = h


@jax.jit
def _g_apply(x_pad, weights, slopes):
    rows, in_dim = x_pad.shape
    out_dim = weights[-2].shape[1]
    tile_r = min(rows, 256)
    grid = (rows // tile_r,)

    in_specs = [pl.BlockSpec((tile_r, in_dim), lambda i: (i, 0))]
    for w in weights:
        in_specs.append(pl.BlockSpec(w.shape, _const_map(w.ndim)))
    in_specs.append(pl.BlockSpec(memory_space=pltpu.MemorySpace.SMEM))

    return pl.pallas_call(
        _g_mlp_kernel,
        grid=grid,
        out_shape=jax.ShapeDtypeStruct((rows, out_dim), jnp.float32),
        in_specs=in_specs,
        out_specs=pl.BlockSpec((tile_r, out_dim), lambda i: (i, 0)),
        compiler_params=pltpu.CompilerParams(
            dimension_semantics=("parallel",),
            vmem_limit_bytes=_VMEM_LIMIT),
    )(x_pad, *weights, slopes)


# ============================================================================
# Fused f MLP + final H->1 projection + masked log-softmax.
# Rows are laid out b-major (row = b*kp + k); the epilogue produces a
# lane-dense (batch, kp) logits block and a fully vectorized softmax.
# ============================================================================
def _f_mlp_kernel(x_ref, *refs, batch, kp):
    o_ref = refs[-1]
    kp1_ref = refs[-2]        # SMEM (1,) int32: actual K+1
    slopes_ref = refs[-3]     # SMEM (5,) f32
    wfin_ref = refs[-4]       # VMEM (1, H) bf16
    wb = refs[:-4]
    n_layers = len(wb) // 2

    h = x_ref[...]                                           # (batch*kp, D)
    for i in range(n_layers):
        w = wb[2 * i][...]
        b = wb[2 * i + 1][...]
        h = jnp.dot(h.astype(jnp.bfloat16), w,
                    preferred_element_type=jnp.float32) + b
        a = slopes_ref[i]
        h = jnp.where(h > 0, h, a * h)

    # Final Linear(H, 1, bias=False): per-batch (1,H) x (kp,H)^T -> (1, kp),
    # stacked into a lane-dense (batch, kp) block.
    h16 = h.astype(jnp.bfloat16)
    wfin = wfin_ref[...]
    pieces = []
    for b_ in range(batch):
        hb = h16[b_ * kp:(b_ + 1) * kp, :]
        pieces.append(jax.lax.dot_general(
            wfin, hb, (((1,), (1,)), ((), ())),
            preferred_element_type=jnp.float32))             # (1, kp)
    logits = jnp.concatenate(pieces, axis=0)                 # (batch, kp)

    kidx = jax.lax.broadcasted_iota(jnp.int32, (batch, kp), 1)
    valid = kidx < kp1_ref[0]
    lb = jnp.where(valid, logits, -1e30)
    m = jnp.max(lb, axis=-1, keepdims=True)
    lse = m + jnp.log(jnp.sum(jnp.exp(lb - m), axis=-1, keepdims=True))
    o_ref[...] = lb - lse


@functools.partial(jax.jit, static_argnames=("batch", "kp"))
def _f_apply(uu_flat, kp1, weights, wfin, slopes, batch, kp):
    in_specs = ([pl.BlockSpec(memory_space=pltpu.MemorySpace.VMEM)]
                * (2 + len(weights))
                + [pl.BlockSpec(memory_space=pltpu.MemorySpace.SMEM)] * 2)
    return pl.pallas_call(
        functools.partial(_f_mlp_kernel, batch=batch, kp=kp),
        out_shape=jax.ShapeDtypeStruct((batch, kp), jnp.float32),
        in_specs=in_specs,
        out_specs=pl.BlockSpec(memory_space=pltpu.MemorySpace.VMEM),
    )(uu_flat, *weights, wfin, slopes, kp1)


# ----------------------------------------------------------------------------
# Deterministic parameter init helpers
# ----------------------------------------------------------------------------
def _linear_init(key, fan_in, fan_out, bias=True):
    k1, k2 = jax.random.split(key)
    bound = 1.0 / np.sqrt(fan_in)
    w = jax.random.uniform(k1, (fan_in, fan_out), jnp.float32, -bound, bound)
    b = (jax.random.uniform(k2, (fan_out,), jnp.float32, -bound, bound)
         if bias else None)
    return w, b


class NCPTrainerPallas:
    """JAX/Pallas port of NCP_Trainer (forward semantics)."""

    def __init__(self, params, key):
        self.params = params
        self.previous_n = 0
        self.previous_K = 1
        self.g_dim = params["g_dim"]
        self.h_dim = params["h_dim"]
        H = params["H_dim"]
        C = params["n_channels"]
        planes = params["resnet_planes"]
        self.n_blocks = params["resnet_blocks"]

        # eval-mode BN (mu=0, var=1, gamma=1, beta=0) folded into the conv.
        # TODO(synk): fold real BN running stats here when importing trained
        #   PyTorch weights (and transpose conv weights (cout,cin,k)->(k*cin,cout)).
        bn_fold = 1.0 / np.sqrt(1.0 + 1e-5)
        keys = iter(jax.random.split(key, 64))

        def conv_w(k, cin, cout):
            # packed as (3*cin, cout), k-major rows: taps [t-1, t, t+1]
            w, _ = _linear_init(k, 3 * cin, cout, bias=False)
            return (w * bn_fold).astype(jnp.bfloat16)

        # --- encoder h (ResNet1D), weights packed as one flat tuple ---
        enc = [conv_w(next(keys), C, planes), jnp.zeros((1, planes), jnp.float32)]
        for _ in range(self.n_blocks):
            enc += [conv_w(next(keys), planes, planes),
                    jnp.zeros((1, planes), jnp.float32),
                    conv_w(next(keys), planes, planes),
                    jnp.zeros((1, planes), jnp.float32)]
        fc_w, fc_b = _linear_init(next(keys), planes, self.h_dim)
        enc += [fc_w.astype(jnp.bfloat16), fc_b.reshape(1, -1)]
        self.enc_weights = tuple(enc)

        # --- g MLP: h_dim -> H x5 (PReLU) -> g_dim ---
        g_dims = [(self.h_dim, H)] + [(H, H)] * 4 + [(H, self.g_dim)]
        gw = []
        for fi, fo in g_dims:
            w, b = _linear_init(next(keys), fi, fo)
            gw += [w.astype(jnp.bfloat16), b.reshape(1, -1)]
        self.g_weights = tuple(gw)
        self.g_slopes = jnp.full((5,), 0.25, jnp.float32)   # nn.PReLU default

        # --- f MLP: (g_dim + 2*h_dim) -> H x5 (PReLU) -> 1 (no bias) ---
        in_f = self.g_dim + 2 * self.h_dim
        f_dims = [(in_f, H)] + [(H, H)] * 4
        fw = []
        for fi, fo in f_dims:
            w, b = _linear_init(next(keys), fi, fo)
            fw += [w.astype(jnp.bfloat16), b.reshape(1, -1)]
        self.f_weights = tuple(fw)
        wfin, _ = _linear_init(next(keys), H, 1, bias=False)
        self.f_wfin = wfin.reshape(1, H).astype(jnp.bfloat16)
        self.f_slopes = jnp.full((5,), 0.25, jnp.float32)

    # ---------------- encoder ----------------
    def encode(self, x_mct):  # x: (M, C, T)
        M, C, T = x_mct.shape
        # bf16 stream halves the dominant HBM->VMEM DMA (accum stays f32).
        x = jnp.transpose(x_mct, (0, 2, 1)).astype(jnp.bfloat16)   # (M, T, C)
        tile_m = _choose_tile_m(M, T)
        m_pad = ((M + tile_m - 1) // tile_m) * tile_m
        if m_pad != M:
            x = jnp.concatenate(
                [x, jnp.zeros((m_pad - M, T, C), x.dtype)], axis=0)
        x2d = x.reshape(m_pad * T, C)
        nf, nl, pool = _encoder_constants(tile_m, T)
        hs = _encoder_apply(x2d, nf, nl, pool, self.enc_weights,
                            n_blocks=self.n_blocks, t_len=T, tile_m=tile_m,
                            h_dim=self.h_dim)
        return hs[:M]

    # ---------------- g MLP (rows padded to pow2 buckets >=16) --------------
    def apply_g(self, x):
        rows = x.shape[0]
        rpad = _bucket_pow2(rows, minimum=16)
        xp = x.astype(jnp.float32)
        if rpad != rows:
            xp = jnp.concatenate(
                [xp, jnp.zeros((rpad - rows, x.shape[1]), jnp.float32)], axis=0)
        out = _g_apply(xp, self.g_weights, self.g_slopes)
        return out[:rows]

    # ---------------- f MLP + log-softmax (K+1 bucketed, masked) ------------
    def apply_f_logsoftmax(self, uu, K):
        B, kp1, D = uu.shape
        kp = _bucket_pow2(kp1, minimum=16)
        if kp != kp1:
            uu = jnp.concatenate(
                [uu, jnp.zeros((B, kp - kp1, D), uu.dtype)], axis=1)
        uu_flat = uu.reshape(B * kp, D).astype(jnp.float32)
        out = _f_apply(uu_flat, jnp.array([kp1], jnp.int32), self.f_weights,
                       self.f_wfin, self.f_slopes, batch=B, kp=kp)
        return out[:, :kp1]

    # ---------------- stateful forward (mirrors the PyTorch control flow) ---
    def forward(self, data, cs, n):
        assert n == self.previous_n + 1
        self.previous_n += 1
        cs_np = np.asarray(cs)
        K = len(set(int(c) for c in cs_np[:n]))

        if n == 1:
            self.batch_size = data.shape[0]
            self.N = data.shape[1]
            B, Nn, C, T = data.shape
            # (cs == relabel(cs)).all() assumed by construction of cs.
            flat = data.reshape(B * Nn, C, T)
            self.hs = self.encode(flat).reshape(B, Nn, self.h_dim)
            self.Q = jnp.sum(self.hs[:, 2:, :], axis=1)
            self.Hs = self.hs[:, 0, :][:, None, :]
            gss = self.apply_g(self.Hs.reshape(B, self.h_dim))
            self.gs = [[gss]]
            self.Hs = jnp.concatenate(
                [self.Hs, jnp.zeros((B, 1, self.h_dim), jnp.float32)], axis=1)
            self.Hs = self.Hs + self.hs[:, 1, :][:, None, :]
            self.new_gs = self.apply_g(
                self.Hs.reshape(B * 2, self.h_dim)).reshape(B, 2, self.g_dim)
            self.Hs = self.Hs - self.hs[:, 1, :][:, None, :]
        else:
            B = self.batch_size
            c = int(cs_np[n - 1])
            self.Hs = self.Hs.at[:, c, :].add(self.hs[:, n - 1, :])
            if K == self.previous_K:
                self.gs[c].append(self.new_gs[:, c, :])
            else:
                self.Hs = jnp.concatenate(
                    [self.Hs, jnp.zeros((B, 1, self.h_dim), jnp.float32)], axis=1)
                self.gs.append([self.new_gs[:, c, :]])
            self.Hs = self.Hs + self.hs[:, n, :][:, None, :]
            self.new_gs = self.apply_g(
                self.Hs.reshape(B * (K + 1), self.h_dim)).reshape(B, K + 1, self.g_dim)
            self.Hs = self.Hs - self.hs[:, n, :][:, None, :]
            if n == self.N - 1:
                self.Q = jnp.zeros((B, self.h_dim), jnp.float32)
                self.previous_n = 0
            else:
                self.Q = self.Q - self.hs[:, n, :]

        self.previous_K = K
        assert self.Hs.shape[1] == K + 1

        B = self.batch_size
        # Vectorized uu construction (single set of XLA ops, no per-k Python
        # concat/stack chain).
        gs_last = jnp.stack([self.gs[k][-1] for k in range(K)], axis=1)  # (B,K,g)
        G = jnp.sum(gs_last, axis=1)                                     # (B,g)
        delta = jnp.concatenate(
            [-gs_last, jnp.zeros((B, 1, self.g_dim), jnp.float32)], axis=1)
        Gk_all = G[:, None, :] + delta + self.new_gs                     # (B,K+1,g)
        hs_n = self.hs[:, n, :]
        Qb = jnp.broadcast_to(self.Q[:, None, :], (B, K + 1, self.h_dim))
        hnb = jnp.broadcast_to(hs_n[:, None, :], (B, K + 1, self.h_dim))
        uu = jnp.concatenate([Gk_all, Qb, hnb], axis=2)  # (B,K+1,g+2h)

        return self.apply_f_logsoftmax(uu, K)


# ----------------------------------------------------------------------------
if __name__ == "__main__":
    params = dict(
        g_dim=32, h_dim=32, H_dim=64,
        n_channels=4, resnet_blocks=1, resnet_planes=16,
        device=None,
    )
    key = jax.random.PRNGKey(0)
    k_model, k_data = jax.random.split(key)

    model = NCPTrainerPallas(params, k_model)

    B, N, C, T = 2, 8, 4, 16
    data = jax.random.normal(k_data, (B, N, C, T), jnp.float32)
    # cluster assignments already in "relabel" canonical form
    cs = np.array([0, 0, 1, 1, 0, 2, 1, 0], dtype=np.int32)

    out = None
    for n in (1, 2, 3):
        out = model.forward(data, cs, n)
    jax.block_until_ready(out)
    assert out.shape == (B, len(set(int(c) for c in cs[:3])) + 1)
    assert bool(jnp.all(jnp.isfinite(out)))
    print("KERNEL_OK")
</pallas_src>

<mosaic_0001>
module attributes {stable_mosaic.version = 11 : i64} {
  func.func @_encoder_kernel(%arg0: i32, %arg1: memref<128x4xbf16, #tpu.memory_space<vmem>>, %arg2: memref<128x1xf32, #tpu.memory_space<vmem>>, %arg3: memref<128x1xf32, #tpu.memory_space<vmem>>, %arg4: memref<8x128xbf16, #tpu.memory_space<vmem>>, %arg5: memref<12x16xbf16, #tpu.memory_space<vmem>>, %arg6: memref<1x16xf32, #tpu.memory_space<vmem>>, %arg7: memref<48x16xbf16, #tpu.memory_space<vmem>>, %arg8: memref<1x16xf32, #tpu.memory_space<vmem>>, %arg9: memref<48x16xbf16, #tpu.memory_space<vmem>>, %arg10: memref<1x16xf32, #tpu.memory_space<vmem>>, %arg11: memref<16x32xbf16, #tpu.memory_space<vmem>>, %arg12: memref<1x32xf32, #tpu.memory_space<vmem>>, %arg13: memref<8x32xf32, #tpu.memory_space<vmem>>) attributes {dimension_semantics = [#tpu.dimension_semantics<parallel>], iteration_bounds = array<i64: 2>, scalar_prefetch = 0 : i64, scratch_operands = 0 : i64, tpu.core_type = #tpu.core_type<tc>, window_params = [{transform_indices = @transform_0, window_bounds = array<i64: 128, 4>}, {pipeline_mode = #tpu.pipeline_mode<synchronous>, transform_indices = @transform_1, window_bounds = array<i64: 128, 1>}, {pipeline_mode = #tpu.pipeline_mode<synchronous>, transform_indices = @transform_2, window_bounds = array<i64: 128, 1>}, {pipeline_mode = #tpu.pipeline_mode<synchronous>, transform_indices = @transform_3, window_bounds = array<i64: 8, 128>}, {pipeline_mode = #tpu.pipeline_mode<synchronous>, transform_indices = @transform_4, window_bounds = array<i64: 12, 16>}, {pipeline_mode = #tpu.pipeline_mode<synchronous>, transform_indices = @transform_5, window_bounds = array<i64: 1, 16>}, {pipeline_mode = #tpu.pipeline_mode<synchronous>, transform_indices = @transform_6, window_bounds = array<i64: 48, 16>}, {pipeline_mode = #tpu.pipeline_mode<synchronous>, transform_indices = @transform_7, window_bounds = array<i64: 1, 16>}, {pipeline_mode = #tpu.pipeline_mode<synchronous>, transform_indices = @transform_8, window_bounds = array<i64: 48, 16>}, {pipeline_mode = #tpu.pipeline_mode<synchronous>, transform_indices = @transform_9, window_bounds = array<i64: 1, 16>}, {pipeline_mode = #tpu.pipeline_mode<synchronous>, transform_indices = @transform_10, window_bounds = array<i64: 16, 32>}, {pipeline_mode = #tpu.pipeline_mode<synchronous>, transform_indices = @transform_11, window_bounds = array<i64: 1, 32>}, {transform_indices = @transform_12, window_bounds = array<i64: 8, 32>}]} {
    %c0 = arith.constant 0 : index
    %c0_0 = arith.constant 0 : index
    %0 = vector.load %arg2[%c0, %c0_0] : memref<128x1xf32, #tpu.memory_space<vmem>>, vector<128x1xf32>
    %c0_1 = arith.constant 0 : index
    %c0_2 = arith.constant 0 : index
    %1 = vector.load %arg3[%c0_1, %c0_2] : memref<128x1xf32, #tpu.memory_space<vmem>>, vector<128x1xf32>
    %c0_3 = arith.constant 0 : index
    %c0_4 = arith.constant 0 : index
    %2 = vector.load %arg1[%c0_3, %c0_4] : memref<128x4xbf16, #tpu.memory_space<vmem>>, vector<128x4xbf16>
    %3 = arith.extf %2 : vector<128x4xbf16> to vector<128x4xf32>
    %c1_i32 = arith.constant 1 : i32
    %4 = tpu.dynamic_rotate %3 by %c1_i32 dim 0 : vector<128x4xf32>, i32 -> vector<128x4xf32>
    %5 = vector.broadcast %0 : vector<128x1xf32> to vector<128x4xf32>
    %6 = arith.mulf %4, %5 : vector<128x4xf32>
    %c127_i32 = arith.constant 127 : i32
    %7 = tpu.dynamic_rotate %3 by %c127_i32 dim 0 : vector<128x4xf32>, i32 -> vector<128x4xf32>
    %8 = vector.broadcast %1 : vector<128x1xf32> to vector<128x4xf32>
    %9 = arith.mulf %7, %8 : vector<128x4xf32>
    %10 = tpu.concatenate %6, %3, %9 in 1 : vector<128x4xf32>, vector<128x4xf32>, vector<128x4xf32> -> vector<128x12xf32>
    %11 = arith.truncf %10 : vector<128x12xf32> to vector<128x12xbf16>
    %c0_5 = arith.constant 0 : index
    %c0_6 = arith.constant 0 : index
    %12 = vector.load %arg5[%c0_5, %c0_6] : memref<12x16xbf16, #tpu.memory_space<vmem>>, vector<12x16xbf16>
    %cst = arith.constant dense<0.000000e+00> : vector<128x16xf32>
    %13 = tpu.matmul %11, %12, %cst {dimension_numbers = #tpu.dot_dimension_numbers<[1], [0], [0], [1], [0, 0, 1, 1], [], []>} : vector<128x12xbf16>, vector<12x16xbf16>, vector<128x16xf32> -> vector<128x16xf32>
    %c0_7 = arith.constant 0 : index
    %c0_8 = arith.constant 0 : index
    %14 = vector.load %arg6[%c0_7, %c0_8] : memref<1x16xf32, #tpu.memory_space<vmem>>, vector<1x16xf32>
    %15 = vector.broadcast %14 : vector<1x16xf32> to vector<128x16xf32>
    %16 = arith.addf %13, %15 : vector<128x16xf32>
    %cst_9 = arith.constant 0.000000e+00 : f32
    %17 = vector.broadcast %cst_9 : f32 to vector<128x16xf32>
    %18 = arith.maximumf %16, %17 : vector<128x16xf32>
    %c1_i32_10 = arith.constant 1 : i32
    %19 = tpu.dynamic_rotate %18 by %c1_i32_10 dim 0 : vector<128x16xf32>, i32 -> vector<128x16xf32>
    %20 = vector.broadcast %0 : vector<128x1xf32> to vector<128x16xf32>
    %21 = arith.mulf %19, %20 : vector<128x16xf32>
    %c127_i32_11 = arith.constant 127 : i32
    %22 = tpu.dynamic_rotate %18 by %c127_i32_11 dim 0 : vector<128x16xf32>, i32 -> vector<128x16xf32>
    %23 = vector.broadcast %1 : vector<128x1xf32> to vector<128x16xf32>
    %24 = arith.mulf %22, %23 : vector<128x16xf32>
    %25 = tpu.concatenate %21, %18, %24 in 1 : vector<128x16xf32>, vector<128x16xf32>, vector<128x16xf32> -> vector<128x48xf32>
    %26 = arith.truncf %25 : vector<128x48xf32> to vector<128x48xbf16>
    %c0_12 = arith.constant 0 : index
    %c0_13 = arith.constant 0 : index
    %27 = vector.load %arg7[%c0_12, %c0_13] : memref<48x16xbf16, #tpu.memory_space<vmem>>, vector<48x16xbf16>
    %cst_14 = arith.constant dense<0.000000e+00> : vector<128x16xf32>
    %28 = tpu.matmul %26, %27, %cst_14 {dimension_numbers = #tpu.dot_dimension_numbers<[1], [0], [0], [1], [0, 0, 1, 1], [], []>} : vector<128x48xbf16>, vector<48x16xbf16>, vector<128x16xf32> -> vector<128x16xf32>
    %c0_15 = arith.constant 0 : index
    %c0_16 = arith.constant 0 : index
    %29 = vector.load %arg8[%c0_15, %c0_16] : memref<1x16xf32, #tpu.memory_space<vmem>>, vector<1x16xf32>
    %30 = vector.broadcast %29 : vector<1x16xf32> to vector<128x16xf32>
    %31 = arith.addf %28, %30 : vector<128x16xf32>
    %cst_17 = arith.constant 0.000000e+00 : f32
    %32 = vector.broadcast %cst_17 : f32 to vector<128x16xf32>
    %33 = arith.maximumf %31, %32 : vector<128x16xf32>
    %c1_i32_18 = arith.constant 1 : i32
    %34 = tpu.dynamic_rotate %33 by %c1_i32_18 dim 0 : vector<128x16xf32>, i32 -> vector<128x16xf32>
    %35 = vector.broadcast %0 : vector<128x1xf32> to vector<128x16xf32>
    %36 = arith.mulf %34, %35 : vector<128x16xf32>
    %c127_i32_19 = arith.constant 127 : i32
    %37 = tpu.dynamic_rotate %33 by %c127_i32_19 dim 0 : vector<128x16xf32>, i32 -> vector<128x16xf32>
    %38 = vector.broadcast %1 : vector<128x1xf32> to vector<128x16xf32>
    %39 = arith.mulf %37, %38 : vector<128x16xf32>
    %40 = tpu.concatenate %36, %33, %39 in 1 : vector<128x16xf32>, vector<128x16xf32>, vector<128x16xf32> -> vector<128x48xf32>
    %41 = arith.truncf %40 : vector<128x48xf32> to vector<128x48xbf16>
    %c0_20 = arith.constant 0 : index
    %c0_21 = arith.constant 0 : index
    %42 = vector.load %arg9[%c0_20, %c0_21] : memref<48x16xbf16, #tpu.memory_space<vmem>>, vector<48x16xbf16>
    %cst_22 = arith.constant dense<0.000000e+00> : vector<128x16xf32>
    %43 = tpu.matmul %41, %42, %cst_22 {dimension_numbers = #tpu.dot_dimension_numbers<[1], [0], [0], [1], [0, 0, 1, 1], [], []>} : vector<128x48xbf16>, vector<48x16xbf16>, vector<128x16xf32> -> vector<128x16xf32>
    %c0_23 = arith.constant 0 : index
    %c0_24 = arith.constant 0 : index
    %44 = vector.load %arg10[%c0_23, %c0_24] : memref<1x16xf32, #tpu.memory_space<vmem>>, vector<1x16xf32>
    %45 = vector.broadcast %44 : vector<1x16xf32> to vector<128x16xf32>
    %46 = arith.addf %43, %45 : vector<128x16xf32>
    %47 = arith.addf %46, %18 : vector<128x16xf32>
    %cst_25 = arith.constant 0.000000e+00 : f32
    %48 = vector.broadcast %cst_25 : f32 to vector<128x16xf32>
    %49 = arith.maximumf %47, %48 : vector<128x16xf32>
    %c0_26 = arith.constant 0 : index
    %c0_27 = arith.constant 0 : index
    %50 = vector.load %arg4[%c0_26, %c0_27] : memref<8x128xbf16, #tpu.memory_space<vmem>>, vector<8x128xbf16>
    %51 = arith.truncf %49 : vector<128x16xf32> to vector<128x16xbf16>
    %cst_28 = arith.constant dense<0.000000e+00> : vector<8x16xf32>
    %52 = tpu.matmul %50, %51, %cst_28 {dimension_numbers = #tpu.dot_dimension_numbers<[1], [0], [0], [1], [0, 0, 1, 1], [], []>} : vector<8x128xbf16>, vector<128x16xbf16>, vector<8x16xf32> -> vector<8x16xf32>
    %cst_29 = arith.constant 6.250000e-02 : f32
    %53 = vector.broadcast %cst_29 : f32 to vector<8x16xf32>
    %54 = arith.mulf %52, %53 : vector<8x16xf32>
    %55 = arith.truncf %54 : vector<8x16xf32> to vector<8x16xbf16>
    %c0_30 = arith.constant 0 : index
    %c0_31 = arith.constant 0 : index
    %56 = vector.load %arg11[%c0_30, %c0_31] : memref<16x32xbf16, #tpu.memory_space<vmem>>, vector<16x32xbf16>
    %cst_32 = arith.constant dense<0.000000e+00> : vector<8x32xf32>
    %57 = tpu.matmul %55, %56, %cst_32 {dimension_numbers = #tpu.dot_dimension_numbers<[1], [0], [0], [1], [0, 0, 1, 1], [], []>} : vector<8x16xbf16>, vector<16x32xbf16>, vector<8x32xf32> -> vector<8x32xf32>
    %c0_33 = arith.constant 0 : index
    %c0_34 = arith.constant 0 : index
    %58 = vector.load %arg12[%c0_33, %c0_34] : memref<1x32xf32, #tpu.memory_space<vmem>>, vector<1x32xf32>
    %59 = vector.broadcast %58 : vector<1x32xf32> to vector<8x32xf32>
    %60 = arith.addf %57, %59 : vector<8x32xf32>
    %c0_35 = arith.constant 0 : index
    %c0_36 = arith.constant 0 : index
    %61 = vector.load %arg13[%c0_35, %c0_36] : memref<8x32xf32, #tpu.memory_space<vmem>>, vector<8x32xf32>
    tpu.vector_store %arg13[%c0_35, %c0_36], %60 {strides = array<i32>} : memref<8x32xf32, #tpu.memory_space<vmem>>, vector<8x32xf32>,
    return
  }
  func.func @transform_0(%arg0: i32) -> (i32, i32) {
    %c0_i32 = arith.constant 0 : i32
    %c0_i32_0 = arith.constant 0 : i32
    return %arg0, %c0_i32 : i32, i32
  }
  func.func @transform_1(%arg0: i32) -> (i32, i32) {
    %c0_i32 = arith.constant 0 : i32
    %c0_i32_0 = arith.constant 0 : i32
    %c0_i32_1 = arith.constant 0 : i32
    return %c0_i32, %c0_i32_0 : i32, i32
  }
  func.func @transform_2(%arg0: i32) -> (i32, i32) {
    %c0_i32 = arith.constant 0 : i32
    %c0_i32_0 = arith.constant 0 : i32
    %c0_i32_1 = arith.constant 0 : i32
    return %c0_i32, %c0_i32_0 : i32, i32
  }
  func.func @transform_3(%arg0: i32) -> (i32, i32) {
    %c0_i32 = arith.constant 0 : i32
    %c0_i32_0 = arith.constant 0 : i32
    %c0_i32_1 = arith.constant 0 : i32
    return %c0_i32, %c0_i32_0 : i32, i32
  }
  func.func @transform_4(%arg0: i32) -> (i32, i32) {
    %c0_i32 = arith.constant 0 : i32
    %c0_i32_0 = arith.constant 0 : i32
    %c0_i32_1 = arith.constant 0 : i32
    return %c0_i32, %c0_i32_0 : i32, i32
  }
  func.func @transform_5(%arg0: i32) -> (i32, i32) {
    %c0_i32 = arith.constant 0 : i32
    %c0_i32_0 = arith.constant 0 : i32
    %c0_i32_1 = arith.constant 0 : i32
    return %c0_i32, %c0_i32_0 : i32, i32
  }
  func.func @transform_6(%arg0: i32) -> (i32, i32) {
    %c0_i32 = arith.constant 0 : i32
    %c0_i32_0 = arith.constant 0 : i32
    %c0_i32_1 = arith.constant 0 : i32
    return %c0_i32, %c0_i32_0 : i32, i32
  }
  func.func @transform_7(%arg0: i32) -> (i32, i32) {
    %c0_i32 = arith.constant 0 : i32
    %c0_i32_0 = arith.constant 0 : i32
    %c0_i32_1 = arith.constant 0 : i32
    return %c0_i32, %c0_i32_0 : i32, i32
  }
  func.func @transform_8(%arg0: i32) -> (i32, i32) {
    %c0_i32 = arith.constant 0 : i32
    %c0_i32_0 = arith.constant 0 : i32
    %c0_i32_1 = arith.constant 0 : i32
    return %c0_i32, %c0_i32_0 : i32, i32
  }
  func.func @transform_9(%arg0: i32) -> (i32, i32) {
    %c0_i32 = arith.constant 0 : i32
    %c0_i32_0 = arith.constant 0 : i32
    %c0_i32_1 = arith.constant 0 : i32
    return %c0_i32, %c0_i32_0 : i32, i32
  }
  func.func @transform_10(%arg0: i32) -> (i32, i32) {
    %c0_i32 = arith.constant 0 : i32
    %c0_i32_0 = arith.constant 0 : i32
    %c0_i32_1 = arith.constant 0 : i32
    return %c0_i32, %c0_i32_0 : i32, i32
  }
  func.func @transform_11(%arg0: i32) -> (i32, i32) {
    %c0_i32 = arith.constant 0 : i32
    %c0_i32_0 = arith.constant 0 : i32
    %c0_i32_1 = arith.constant 0 : i32
    return %c0_i32, %c0_i32_0 : i32, i32
  }
  func.func @transform_12(%arg0: i32) -> (i32, i32) {
    %c0_i32 = arith.constant 0 : i32
    %c0_i32_0 = arith.constant 0 : i32
    return %arg0, %c0_i32 : i32, i32
  }
}

</mosaic_0001>

<bundles_post_ra>
// kernel: _encoder_apply.1
= control target key start
LH: loop header
LB: loop body
LE: loop exit
PB: predicated region body
PF: predicated region fallthrough
CT: control target
= control target key end

     0   :  { %s3541_s0 = inlined_call_operand.vmem [shape: bf16[256,4], index: 0, kind: input, shape index: {}]   ;;  %s3542_s1 = inlined_call_operand.vmem [shape: f32[128,1], index: 1, kind: input, shape index: {}]   ;;  %s3543_s2 = inlined_call_operand.vmem [shape: f32[128,1], index: 2, kind: input, shape index: {}]   ;;  %s3544_s3 = inlined_call_operand.vmem [shape: bf16[8,128], index: 3, kind: input, shape index: {}]   ;;  %s3545_s4 = inlined_call_operand.vmem [shape: bf16[12,16], index: 4, kind: input, shape index: {}]   ;;  %s3546_s5 = inlined_call_operand.vmem [shape: f32[1,16], index: 5, kind: input, shape index: {}]   ;;  %s3547_s6 = inlined_call_operand.vmem [shape: bf16[48,16], index: 6, kind: input, shape index: {}]   ;;  %s3548_s7 = inlined_call_operand.vmem [shape: f32[1,16], index: 7, kind: input, shape index: {}]   ;;  %s3549_s8 = inlined_call_operand.vmem [shape: bf16[48,16], index: 8, kind: input, shape index: {}]   ;;  %s3550_s9 = inlined_call_operand.vmem [shape: f32[1,16], index: 9, kind: input, shape index: {}]   ;;  %s3551_s10 = inlined_call_operand.vmem [shape: bf16[16,32], index: 10, kind: input, shape index: {}]   ;;  %s3552_s11 = inlined_call_operand.vmem [shape: f32[1,32], index: 11, kind: input, shape index: {}]   ;;  %s3553_s12 = inlined_call_operand.hbm [shape: f32[16,32], index: 12, kind: output, shape index: {}]  }
   0x1   :  { %3563 = sst [smem:[#allocation12_spill]] %s3541_s0 }
   0x2   :  { %3564 = sst [smem:[#allocation13_spill]] %s3542_s1 }
   0x3   :  { %17 = vsyncpa [#allocation3], 0 }
   0x4   :  { %19 = vsyncpa [#allocation3 + $0x1], 0  ;;  %s2463_s21 = smov 0   ;;  %s2465_s22 = smov 0  }
   0x5   :  { %s2467_s23 = smov 0   ;;  %s2469_s24 = smov 0  }
   0x6 LB: > { %3565 = sst [smem:[#allocation5_spill]] %s2387_s23  ;;  %s2484_s25 = sadd.s32 4294967295, %s2391_s24   ;;  %s2391_s24 = sphi %s2469_s24, %s3588_s24   ;;  %s2387_s23 = sphi %s2467_s23, %s3585_s23   ;;  %s2383_s22 = sphi %s2465_s22, %s3587_s22   ;;  %s2379_s21 = sphi %s2463_s21, %s3586_s21  }
   0x7   : > { %s1923_s26 = sadd.s32 4294967294, %s2391_s24   ;;  %s2488_s27 = sadd.s32 1, %s2391_s24  }
   0x8   : > { %s289_s28 = sadd.s32 1, %s2387_s23  ;;  %s286_s29 = ssub.s32 %s2391_s24, %s2488_s27 }
   0x9   : > { %p299_p0 = scmp.ne.s32.totalorder %s2387_s23, %s2383_s22  ;;  %p287_p1 = scmp.eq.s32.totalorder %s286_s29, 0 }
   0xa   : > { %p300_p2 = scmp.eq.s32.totalorder %s2484_s25, 1  ;;  %p305_p3 = scmp.ne.s32.totalorder %s2383_s22, %s2379_s21 }
   0xb   : > { %p306_p4 = scmp.eq.s32.totalorder %s1923_s26, 1  ;;  %p1926_p7 = scmp.ge.s32.totalorder %s2391_s24, 1 }
   0xc   : > { %s2499_s30 = scalar_select %p287_p1, %s2387_s23, %s289_s28  }
   0xd   : > { %p2501_p5 = por %p300_p2, %p299_p0  ;;  %p2505_p6 = por %p306_p4, %p305_p3 }
   0xe   : > { %3566 = sst [smem:[#allocation6_spill]] %s2499_s30  ;;  %p366_p8 = scmp.lt.s32.totalorder %s2391_s24, 3 }
  0x10   : > { %p367_p9 = pnand %p1926_p7, %p366_p8 }
  0x12   : > { %370 = sbr.rel (%p367_p9) target bundleno = 1386 (0x56a), region = 68 }
  0x17   : > { %v435_v0 = vld [vmem:[%s3543_s2 + $0x20] sm:$0xff]  ;;  %v433_v1 = vld [vmem:[%s3543_s2 + $0x10] sm:$0xff]  ;;  %s1928_s26 = sshll.u32 %s2484_s25, 4  ;;  %v2393_v3 = vmov 0   ;;  %s3569_s0 = sld [smem:[#allocation12_spill]]  ;;  %v436_v4 = vld [vmem:[%s3543_s2 + $0x28] sm:$0xff]  ;;  %v495_v53 = vlaneseq }
  0x18   : > { %v431_v2 = vld [vmem:[%s3543_s2] sm:$0xff]  ;;  %2084 = vset.pattern.permute.xlu2 %v2393_v3  ;;  %2083 = vset.pattern.permute.xlu1 %v2393_v3  ;;  %p409_p10 = scmp.lt.s32.totalorder %s1928_s26, 31  ;;  %v434_v6 = vld [vmem:[%s3543_s2 + $0x18] sm:$0xff]  ;;  %v432_v7 = vld [vmem:[%s3543_s2 + $0x8] sm:$0xff]  ;;  %s3570_s1 = sld [smem:[#allocation13_spill]]  ;;  %vm945_vm2 = vcmask 1045504  }
  0x19   : > { %2082 = vset.pattern.permute.xlu0 %v2393_v3  ;;  %665 = vperm.xlu2 %2084, %v435_v0   ;;  %s2394_s23 = smov 4   ;;  %v438_v13 = vld [vmem:[%s3543_s2 + $0x38] sm:$0xff]  ;;  %v437_v15 = vld [vmem:[%s3543_s2 + $0x30] sm:$0xff]  ;;  %v440_v20 = vld [vmem:[%s3543_s2 + $0x48] sm:$0xff]  ;;  %v2649_v55 = vshrl.u32 %v495_v53, 7  ;;  %s2395_s30 = smov 8  }
  0x1a   : > { %655 = vperm.xlu1 %2083, %v433_v1   ;;  %645 = vperm.xlu0 %2082, %v431_v2   ;;  %s3590_s26 = smov (!%p409_p10, %s1928_s26), 31  ;;  %v439_v22 = vld [vmem:[%s3543_s2 + $0x40] sm:$0xff]  ;;  %v442_v27 = vld [vmem:[%s3543_s2 + $0x58] sm:$0xff]  ;;  %v441_v29 = vld [vmem:[%s3543_s2 + $0x50] sm:$0xff]  ;;  %vm867_vm3 = vcmask 31744   ;;  %vm884_vm4 = vcmask 64512  }
  0x1b   : > { %s1929_s28 = sshll.u32 %s3590_s26, 2  ;;  %v444_v34 = vld [vmem:[%s3543_s2 + $0x68] sm:$0xff]  ;;  %v443_v36 = vld [vmem:[%s3543_s2 + $0x60] sm:$0xff]  ;;  %v446_v41 = vld [vmem:[%s3543_s2 + $0x78] sm:$0xff]  ;;  %vm626_vm0 = vcmp.lt.s32.totalorder %v2649_v55, 7  ;;  %vm497_vm1 = vcmp.lt.s32.totalorder %v2649_v55, 1 }
  0x1c   : > { %v445_v43 = vld [vmem:[%s3543_s2 + $0x70] sm:$0xff]  ;;  %vm920_vm5 = vcmask 97280   ;;  %s2396_s29 = smov 16   ;;  %s2397_s15 = smov 32   ;;  %vm1255_vm6 = vcmask 261120   ;;  %vm1238_vm7 = vcmask 130048  }
  0x1d   : > { %s2524_s16 = scalar_lea.vmem %s3569_s0, %s1929_s28  ;;  %vm1308_vm8 = vcmask 392192   ;;  %s405_s17 = sand.u32 1, %s2383_s22  }
  0x1e   : > { %v2000_v5 = vld [vmem:[%s2524_s16] sm:$0xff]   ;;  %v416_v11 = vld [vmem:[%s3570_s1 + $0x8] sm:$0xff]  ;;  %v418_v19 = vld [vmem:[%s3570_s1 + $0x18] sm:$0xff]  ;;  %s1988_s18 = sshll.u32 %s2484_s25, 3  ;;  %s1927_s19 = sshll.u32 %s405_s17, 3 }
  0x1f   : > { %v2536_v8 = vunpack.c.l.bf16 %v2000_v5  ;;  %v2538_v9 = vunpack.c.h.bf16 %v2000_v5  ;;  %v415_v12 = vld [vmem:[%s3570_s1] sm:$0xff]  ;;  %v2031_v14 = vld [vmem:[%s2524_s16 + $0x8] sm:$0xff]   ;;  %v2032_v21 = vld [vmem:[%s2524_s16 + $0x10] sm:$0xff]   ;;  %s1849_s25 = scalar_lea.sflag [#allocation3], %s405_s17 }
  0x20   : > { %v2556_v16 = vunpack.c.l.bf16 %v2031_v14  ;;  %v2558_v17 = vunpack.c.h.bf16 %v2031_v14  ;;  %v2573_v23 = vunpack.c.l.bf16 %v2032_v21  ;;  %v2575_v24 = vunpack.c.h.bf16 %v2032_v21  ;;  %v420_v26 = vld [vmem:[%s3570_s1 + $0x28] sm:$0xff]  ;;  %v2033_v28 = vld [vmem:[%s2524_s16 + $0x18] sm:$0xff]   ;;  %v2034_v35 = vld [vmem:[%s2524_s16 + $0x20] sm:$0xff]  }
  0x21   : > { %670 = vperm.xlu2 %2084, %v436_v4   ;;  %v2085_v10 = vpack.i.bf16 %v2538_v9, %v2536_v8  ;;  %v2590_v30 = vunpack.c.l.bf16 %v2033_v28  ;;  %v2592_v31 = vunpack.c.h.bf16 %v2033_v28  ;;  %v422_v33 = vld [vmem:[%s3570_s1 + $0x38] sm:$0xff]  ;;  %v2607_v37 = vunpack.c.l.bf16 %v2034_v35  ;;  %v424_v40 = vld [vmem:[%s3570_s1 + $0x48] sm:$0xff]  ;;  %v427_v51 = vld [vmem:[%s3570_s1 + $0x60] sm:$0xff] }
  0x22   : > { %660 = vperm.xlu1 %2083, %v434_v6   ;;  %650 = vperm.xlu0 %2082, %v432_v7   ;;  %v2095_v18 = vpack.i.bf16 %v2558_v17, %v2556_v16  ;;  %v2105_v25 = vpack.i.bf16 %v2575_v24, %v2573_v23  ;;  %v2609_v38 = vunpack.c.h.bf16 %v2034_v35  ;;  %v2035_v42 = vld [vmem:[%s2524_s16 + $0x28] sm:$0xff]   ;;  %v426_v48 = vld [vmem:[%s3570_s1 + $0x58] sm:$0xff]  ;;  %v429_v52 = vld [vmem:[%s3570_s1 + $0x70] sm:$0xff]  ;;  %v612_v58 = vrot.slane %v2556_v16, 1 }
  0x23   : > { %v2115_v32 = vpack.i.bf16 %v2592_v31, %v2590_v30  ;;  %v2624_v44 = vunpack.c.l.bf16 %v2035_v42  ;;  %v2626_v45 = vunpack.c.h.bf16 %v2035_v42  ;;  %v428_v50 = vld [vmem:[%s3570_s1 + $0x68] sm:$0xff]  ;;  %v610_v59 = vrot.slane %v2536_v8, 1  ;;  %v421_v42 = vld [vmem:[%s3570_s1 + $0x30] sm:$0xff] }
  0x24   : > { %v2125_v39 = vpack.i.bf16 %v2609_v38, %v2607_v37  ;;  %v611_v60 = vrot.slane %v2538_v9, 1  ;;  %v614_v5 = vrot.slane %v2573_v23, 1  ;;  %v613_v6 = vrot.slane %v2558_v17, 1 }
  0x25   : > { %v2135_v47 = vpack.i.bf16 %v2626_v45, %v2624_v44  ;;  %v615_v21 = vrot.slane %v2575_v24, 1 }
  0x26   : > { %v641_v61 = vsel %vm626_vm0, %v610_v59, %v611_v60  ;;  %v640_v63 = vsel %vm626_vm0, %v611_v60, %v612_v58 }
  0x29   : > { %2086 = vrot.lane.b32.xlu2 %v2085_v10, %s2394_s23 }
  0x2a   : > { %521 = vperm.xlu1 %2083, %v416_v11   ;;  %516 = vperm.xlu0 %2082, %v415_v12   ;;  %v417_v11 = vld [vmem:[%s3570_s1 + $0x10] sm:$0xff]  ;;  %v639_v12 = vsel %vm626_vm0, %v612_v58, %v613_v6 }
  0x31   : > { %680 = vperm.xlu2 %2084, %v438_v13   ;;  %v638_v13 = vsel %vm626_vm0, %v613_v6, %v614_v5 }
  0x32   : > { %675 = vperm.xlu1 %2083, %v437_v15  }
  0x39   : > { %2096 = vrot.lane.b32.xlu2 %v2095_v18, %s2394_s23 }
  0x3a   : > { %531 = vperm.xlu1 %2083, %v418_v19  }
  0x41   : > { %690 = vperm.xlu2 %2084, %v440_v20  }
  0x42   : > { %685 = vperm.xlu1 %2083, %v439_v22  }
  0x49   : > { %2106 = vrot.lane.b32.xlu2 %v2105_v25, %s2394_s23  ;;  %v616_v25 = vrot.slane %v2590_v30, 1 }
  0x4a   : > { %541 = vperm.xlu1 %2083, %v420_v26   ;;  %v419_v26 = vld [vmem:[%s3570_s1 + $0x20] sm:$0xff] }
  0x4b   : > { %v636_v28 = vsel %vm626_vm0, %v615_v21, %v616_v25 }
  0x51   : > { %700 = vperm.xlu2 %2084, %v442_v27   ;;  %v637_v27 = vsel %vm626_vm0, %v614_v5, %v615_v21 }
  0x52   : > { %695 = vperm.xlu1 %2083, %v441_v29  }
  0x59   : > { %2116 = vrot.lane.b32.xlu2 %v2115_v32, %s2394_s23 }
  0x5a   : > { %551 = vperm.xlu1 %2083, %v422_v33  }
  0x61   : > { %710 = vperm.xlu2 %2084, %v444_v34  }
  0x62   : > { %705 = vperm.xlu1 %2083, %v443_v36  }
  0x69   : > { %2126 = vrot.lane.b32.xlu2 %v2125_v39, %s2394_s23  ;;  %v617_v39 = vrot.slane %v2592_v31, 1 }
  0x6a   : > { %561 = vperm.xlu1 %2083, %v424_v40   ;;  %v618_v40 = vrot.slane %v2607_v37, 1 }
  0x71   : > { %720 = vperm.xlu2 %2084, %v446_v41  }
  0x72   : > { %715 = vperm.xlu1 %2083, %v445_v43   ;;  %v2037_v43 = vld [vmem:[%s2524_s16 + $0x38] sm:$0xff]  }
  0x73   : > { %v2628_v46 = vpop.permute.xlu2 %665 }
  0x74   : > { %v727_v32 = vmul.f32 %v2628_v46, %v637_v27 }
  0x79   : > { %2136 = vrot.lane.b32.xlu2 %v2135_v47, %s2394_s23  ;;  %v2036_v47 = vld [vmem:[%s2524_s16 + $0x30] sm:$0xff]   ;;  %s407_s16 = scalar_lea.vmem [#allocation2], %s1927_s19  ;;  %s2349_s19 = scalar_lea.hbm %s3553_s12, 16 }
  0x7a   : > { %571 = vperm.xlu1 %2083, %v426_v48   ;;  %v634_v48 = vsel %vm626_vm0, %v617_v39, %v618_v40  ;;  %v2749_v5 = vunpack.c.l.bf16 %v2036_v47 }
  0x7b   : > { %v2636_v49 = vpop.permute.xlu2 %670 }
  0x7c   : > { %v728_v33 = vmul.f32 %v2636_v49, %v636_v28  ;;  %v622_v21 = vrot.slane %v2749_v5, 1 }
  0x7e   : > { %v2110_v35 = vpack.i.bf16 %v728_v33, %v727_v32 }
  0x81   : > { %581 = vperm.xlu2 %2084, %v428_v50   ;;  %v635_v50 = vsel %vm626_vm0, %v616_v25, %v617_v39 }
  0x82   : > { %576 = vperm.xlu1 %2083, %v427_v51   ;;  %v2727_v51 = vunpack.c.h.bf16 %v2036_v47 }
  0x83   : > { %v2647_v54 = vpop.permute.xlu2 %2086 }
  0x84   : > { %v492_v53 = vrot.slane %v2727_v51, 7 }
  0x89   : > { %586 = vperm.xlu2 %2084, %v429_v52   ;;  %v2729_v52 = vunpack.c.l.bf16 %v2037_v43 }
  0x8b   : > { %v2663_v62 = vpop.permute.xlu2 %680  ;;  %v493_v58 = vrot.slane %v2729_v52, 7 }
  0x8c   : > { %v2651_v56 = vpop.permute.xlu1 %655  ;;  %v2653_v57 = vpop.permute.xlu0 %645  ;;  %v730_v60 = vmul.f32 %v2663_v62, %v634_v48 }
  0x8d   : > { %v723_v2 = vmul.f32 %v2653_v57, %v641_v61  ;;  %v725_v14 = vmul.f32 %v2651_v56, %v639_v12  ;;  %v620_v12 = vrot.slane %v2624_v44, 1 }
  0x93   : > { %v2676_v7 = vpop.permute.xlu2 %2096 }
  0x94   : > { %v2667_v0 = vpop.permute.xlu1 %660  ;;  %v2669_v1 = vpop.permute.xlu0 %650 }
  0x95   : > { %v724_v3 = vmul.f32 %v2669_v1, %v640_v63  ;;  %v726_v15 = vmul.f32 %v2667_v0, %v638_v13  ;;  %v623_v13 = vrot.slane %v2727_v51, 1 }
  0x97   : > { %v2090_v4 = vpack.i.bf16 %v724_v3, %v723_v2  ;;  %v2100_v20 = vpack.i.bf16 %v726_v15, %v725_v14  ;;  %v2746_v3 = vsel %vm497_vm1, %v492_v53, %v493_v58  ;;  %v624_v14 = vrot.slane %v2729_v52, 1 }
  0x98   : > { %v629_v28 = vsel %vm626_vm0, %v622_v21, %v623_v13 }
  0x99   : > { %2091 = vrot.lane.b32.xlu0 %v2090_v4, %s2395_s30  ;;  %v628_v27 = vsel %vm626_vm0, %v623_v13, %v624_v14  ;;  %v425_v13 = vld [vmem:[%s3570_s1 + $0x50] sm:$0xff] }
  0x9b   : > { %v2691_v19 = vpop.permute.xlu2 %690 }
  0x9c   : > { %v2678_v10 = vpop.permute.xlu1 %521 }
  0xa1   : > { %526 = vperm.xlu0 %2082, %v417_v11   ;;  %v619_v11 = vrot.slane %v2609_v38, 1 }
  0xa3   : > { %v2705_v29 = vpop.permute.xlu2 %2106  ;;  %v633_v25 = vsel %vm626_vm0, %v618_v40, %v619_v11 }
  0xa4   : > { %v2689_v18 = vpop.permute.xlu1 %675 }
  0xa5   : > { %v729_v61 = vmul.f32 %v2689_v18, %v635_v50  ;;  %v2781_v50 = vunpack.c.h.bf16 %v2037_v43 }
  0xa7   : > { %v2120_v4 = vpack.i.bf16 %v730_v60, %v729_v61  ;;  %v2155_v61 = vpack.i.bf16 %v2781_v50, %v2729_v52 }
  0xa9   : > { %2101 = vrot.lane.b32.xlu0 %v2100_v20, %s2395_s30  ;;  %v423_v20 = vld [vmem:[%s3570_s1 + $0x40] sm:$0xff] }
  0xab   : > { %v2712_v36 = vpop.permute.xlu2 %700 }
  0xac   : > { %v2695_v22 = vpop.permute.xlu1 %531 }
  0xb1   : > { %536 = vperm.xlu0 %2082, %v419_v26   ;;  %v632_v26 = vsel %vm626_vm0, %v619_v11, %v620_v12  ;;  %v625_v11 = vrot.slane %v2781_v50, 1 }
  0xb3   : > { %v2736_v63 = vpop.permute.xlu2 %2116 }
  0xb4   : > { %v2709_v34 = vpop.permute.xlu1 %685 }
  0xb5   : > { %v731_v32 = vmul.f32 %v2709_v34, %v633_v25 }
  0xb9   : > { %2111 = vrot.lane.b32.xlu0 %v2110_v35, %s2395_s30  ;;  %v732_v35 = vmul.f32 %v2691_v19, %v632_v26  ;;  %v642_v26 = vsel %vm626_vm0, %v625_v11, %v610_v59  ;;  %v1932_v59 = vld [vmem:[%s3545_s4] sm:$0xf] }
  0xbb   : > { %v2757_v15 = vpop.permute.xlu2 %710  ;;  %v2130_v47 = vpack.i.bf16 %v732_v35, %v731_v32 }
  0xbc   : > { %v2716_v41 = vpop.permute.xlu1 %541  ;;  %v736_v39 = vmul.f32 %v2757_v15, %v628_v27  ;;  %v627_v27 = vsel %vm626_vm0, %v624_v14, %v625_v11  ;;  %v1991_v14 = vld [vmem:[%s3545_s4] sm:$0x30]  ;;  %v479_v11 = vrot.slane %v2536_v8, 7 }
  0xc1   : > { %546 = vperm.xlu0 %2082, %v421_v42  }
  0xc3   : > { %v2777_v48 = vpop.permute.xlu2 %2126 }
  0xc4   : > { %v2738_v2 = vpop.permute.xlu1 %695 }
  0xc9   : > { %2121 = vrot.lane.b32.xlu0 %v2120_v4, %s2395_s30  ;;  %v621_v4 = vrot.slane %v2626_v45, 1 }
  0xcb   : > { %v630_v43 = vsel %vm626_vm0, %v621_v4, %v622_v21  ;;  %v2797_v25 = vpop.permute.xlu2 %720 }
  0xcc   : > { %v2751_v6 = vpop.permute.xlu1 %551  ;;  %v738_v35 = vmul.f32 %v2797_v25, %v642_v26 }
  0xd1   : > { %556 = vperm.xlu0 %2082, %v423_v20   ;;  %v631_v20 = vsel %vm626_vm0, %v620_v12, %v621_v4  ;;  %v734_v12 = vmul.f32 %v2712_v36, %v630_v43  ;;  %v430_v4 = vld [vmem:[%s3570_s1 + $0x78] sm:$0xff]  ;;  %v2828_v43 = vpop.permute.xlu0 %516 }
  0xd4   : > { %v2772_v33 = vpop.permute.xlu1 %705 }
  0xd5   : > { %v735_v40 = vmul.f32 %v2772_v33, %v629_v28  ;;  %v733_v28 = vmul.f32 %v2738_v2, %v631_v20  ;;  %v494_v20 = vrot.slane %v2781_v50, 7 }
  0xd7   : > { %v2150_v42 = vpack.i.bf16 %v736_v39, %v735_v40  ;;  %v2140_v40 = vpack.i.bf16 %v734_v12, %v733_v28  ;;  %v2089_v28 = vunpack.i.h.bf16 %v2647_v54  ;;  %v2088_v12 = vunpack.i.l.bf16 %v2647_v54 }
  0xd8   : > { %v481_v54 = vrot.slane %v2556_v16, 7 }
  0xd9   : > { %2151 = vrot.lane.b32.xlu1 %v2150_v42, %s2395_s30  ;;  %2131 = vrot.lane.b32.xlu0 %v2130_v47, %s2395_s30  ;;  %v1933_v42 = vor.u32 %v1991_v14, %v1932_v59  ;;  %v2145_v47 = vpack.i.bf16 %v2727_v51, %v2749_v5  ;;  %v498_v51 = vsel %vm497_vm1, %v493_v58, %v494_v20 }
  0xdc   : > { %v2783_v60 = vpop.permute.xlu1 %561 }
  0xe1   : > { %2156 = vrot.lane.b32.xlu1 %v2155_v61, %s2394_s23  ;;  %566 = vperm.xlu0 %2082, %v425_v13   ;;  %v947_v61 = vsel %vm945_vm2, %v1933_v42, 0  ;;  %v480_v13 = vrot.slane %v2538_v9, 7 }
  0xe2   : > { %956 = vmatpush.bf16.msra.mxu0 %v947_v61  ;;  %v482_v61 = vrot.slane %v2558_v17, 7 }
  0xe3   : > { %v512_v26 = vsel %vm497_vm1, %v479_v11, %v480_v13 }
  0xe4   : > { %v2806_v32 = vpop.permute.xlu1 %715  ;;  %v595_v8 = vmul.f32 %v2678_v10, %v512_v26  ;;  %v511_v26 = vsel %vm497_vm1, %v480_v13, %v481_v54 }
  0xe5   : > { %v737_v21 = vmul.f32 %v2806_v32, %v627_v27  ;;  %v513_v27 = vsel %vm497_vm1, %v494_v20, %v479_v11  ;;  %v510_v11 = vsel %vm497_vm1, %v481_v54, %v482_v61  ;;  %v2109_v54 = vunpack.i.h.bf16 %v2705_v29 }
  0xe6   : > { %v594_v9 = vmul.f32 %v2828_v43, %v513_v27  ;;  %v869_v59 = vsel %vm867_vm3, %v595_v8, %v2089_v28  ;;  %v2099_v27 = vunpack.i.h.bf16 %v2676_v7  ;;  %v597_v28 = vmul.f32 %v2695_v22, %v510_v11 }
  0xe7   : > { %v2160_v39 = vpack.i.bf16 %v738_v35, %v737_v21  ;;  %v2098_v8 = vunpack.i.l.bf16 %v2676_v7 }
  0xe9   : > { %2161 = vrot.lane.b32.xlu2 %v2160_v39, %s2395_s30  ;;  %2141 = vrot.lane.b32.xlu0 %v2140_v40, %s2395_s30  ;;  %v868_v40 = vsel %vm867_vm3, %v594_v9, %v2088_v12 }
  0xf1   : > { %2146 = vrot.lane.b32.xlu0 %v2145_v47, %s2394_s23  ;;  %s1861_s23 = sshll.u32 %s407_s16, 4  ;;  %s1862_s23 = int_to_ptr.vmem [resolvable:$true] %s1861_s23 }
  0xf9   : > { %591 = vperm.xlu0 %2082, %v430_v4  }
 0x10b   : > { %v2092_v35 = vpop.permute.xlu0 %2091 }
 0x10c   : > { %v2094_v21 = vunpack.i.h.bf16 %v2092_v35  ;;  %v2093_v39 = vunpack.i.l.bf16 %v2092_v35 }
 0x10e   : > { %v885_v14 = vsel %vm884_vm4, %v868_v40, %v2093_v39  ;;  %v886_v42 = vsel %vm884_vm4, %v869_v59, %v2094_v21  ;;  %v871_v21 = vsel %vm867_vm3, %v597_v28, %v2099_v27  ;;  %v483_v59 = vrot.slane %v2573_v23, 7 }
 0x10f   : > { %v901_v47 = vpack.c.bf16 %v886_v42, %v885_v14  ;;  %v484_v14 = vrot.slane %v2575_v24, 7  ;;  %v2108_v27 = vunpack.i.l.bf16 %v2705_v29 }
 0x111   : > { %1934 = vmatmul.msk.bf16.vlgmr.msra.gmra.mxu0 %vm920_vm5, %v901_v47  ;;  %v508_v7 = vsel %vm497_vm1, %v483_v59, %v484_v14  ;;  %v509_v47 = vsel %vm497_vm1, %v482_v61, %v483_v59 }
 0x112   : > { %v599_v11 = vmul.f32 %v2716_v41, %v508_v7  ;;  %v2118_v7 = vunpack.i.l.bf16 %v2736_v63 }
 0x113   : > { %v2847_v4 = vpop.permute.xlu0 %526 }
 0x114   : > { %v596_v12 = vmul.f32 %v2847_v4, %v511_v26 }
 0x116   : > { %v870_v17 = vsel %vm867_vm3, %v596_v12, %v2098_v8  ;;  %v873_v8 = vsel %vm867_vm3, %v599_v11, %v2109_v54 }
 0x11b   : > { %v2102_v9 = vpop.permute.xlu0 %2101 }
 0x11c   : > { %v2104_v16 = vunpack.i.h.bf16 %v2102_v9  ;;  %v2103_v35 = vunpack.i.l.bf16 %v2102_v9 }
 0x11e   : > { %v887_v39 = vsel %vm884_vm4, %v870_v17, %v2103_v35  ;;  %v888_v40 = vsel %vm884_vm4, %v871_v21, %v2104_v16  ;;  %v485_v35 = vrot.slane %v2590_v30, 7  ;;  %v486_v17 = vrot.slane %v2592_v31, 7 }
 0x11f   : > { %v902_v13 = vpack.c.bf16 %v888_v40, %v887_v39  ;;  %v2119_v40 = vunpack.i.h.bf16 %v2736_v63 }
 0x120   : > { %v506_v29 = vsel %vm497_vm1, %v485_v35, %v486_v17  ;;  %v507_v39 = vsel %vm497_vm1, %v484_v14, %v485_v35 }
 0x121   : > { %1935 = vmatmul.msk.bf16.gmra.mxu0 %vm920_vm5, %v902_v13  ;;  %v601_v13 = vmul.f32 %v2751_v6, %v506_v29 }
 0x123   : > { %v2864_v42 = vpop.permute.xlu0 %536  ;;  %v875_v11 = vsel %vm867_vm3, %v601_v13, %v2119_v40  ;;  %v2137_v13 = vpop.permute.xlu2 %2136 }
 0x124   : > { %v598_v26 = vmul.f32 %v2864_v42, %v509_v47 }
 0x126   : > { %v872_v24 = vsel %vm867_vm3, %v598_v26, %v2108_v27 }
 0x12b   : > { %v2112_v28 = vpop.permute.xlu0 %2111 }
 0x12c   : > { %v2114_v23 = vunpack.i.h.bf16 %v2112_v28  ;;  %v2113_v12 = vunpack.i.l.bf16 %v2112_v28  ;;  %v487_v28 = vrot.slane %v2607_v37, 7  ;;  %v2128_v37 = vunpack.i.l.bf16 %v2777_v48 }
 0x12e   : > { %v889_v9 = vsel %vm884_vm4, %v872_v24, %v2113_v12  ;;  %v890_v16 = vsel %vm884_vm4, %v873_v8, %v2114_v23  ;;  %v488_v23 = vrot.slane %v2609_v38, 7  ;;  %v505_v24 = vsel %vm497_vm1, %v486_v17, %v487_v28 }
 0x12f   : > { %v903_v61 = vpack.c.bf16 %v890_v16, %v889_v9  ;;  %v2129_v8 = vunpack.i.h.bf16 %v2777_v48  ;;  %v2906_v16 = vpop.permute.xlu1 %571 }
 0x130   : > { %v504_v63 = vsel %vm497_vm1, %v487_v28, %v488_v23 }
 0x131   : > { %1936 = vmatmul.msk.bf16.gmra.mxu0 %vm920_vm5, %v903_v61  ;;  %v603_v9 = vmul.f32 %v2783_v60, %v504_v63 }
 0x133   : > { %v2881_v21 = vpop.permute.xlu0 %546  ;;  %v877_v40 = vsel %vm867_vm3, %v603_v9, %v2129_v8 }
 0x134   : > { %v600_v59 = vmul.f32 %v2881_v21, %v507_v39 }
 0x136   : > { %v874_v31 = vsel %vm867_vm3, %v600_v59, %v2118_v7 }
 0x137   : > { %v2917_v48 = vpop.permute.xlu1 %576 }
 0x13b   : > { %v2122_v47 = vpop.permute.xlu0 %2121 }
 0x13c   : > { %v2124_v30 = vunpack.i.h.bf16 %v2122_v47  ;;  %v2123_v54 = vunpack.i.l.bf16 %v2122_v47  ;;  %v489_v47 = vrot.slane %v2624_v44, 7 }
 0x13e   : > { %v891_v26 = vsel %vm884_vm4, %v874_v31, %v2123_v54  ;;  %v892_v27 = vsel %vm884_vm4, %v875_v11, %v2124_v30  ;;  %v490_v30 = vrot.slane %v2626_v45, 7  ;;  %v503_v11 = vsel %vm497_vm1, %v488_v23, %v489_v47 }
 0x13f   : > { %v904_v14 = vpack.c.bf16 %v892_v27, %v891_v26  ;;  %v2925_v26 = vpop.permute.xlu2 %581  ;;  %v2139_v27 = vunpack.i.h.bf16 %v2137_v13 }
 0x140   : > { %v502_v31 = vsel %vm497_vm1, %v489_v47, %v490_v30 }
 0x141   : > { %1937 = vmatmul.msk.bf16.gmra.mxu0 %vm920_vm5, %v904_v14  ;;  %v2138_v14 = vunpack.i.l.bf16 %v2137_v13  ;;  %v605_v28 = vmul.f32 %v2906_v16, %v502_v31 }
 0x143   : > { %v2898_v12 = vpop.permute.xlu0 %556 }
 0x144   : > { %v602_v61 = vmul.f32 %v2898_v12, %v505_v24 }
 0x146   : > { %v876_v39 = vsel %vm867_vm3, %v602_v61, %v2128_v37  ;;  %v879_v61 = vsel %vm867_vm3, %v605_v28, %v2139_v27 }
 0x14b   : > { %v2132_v35 = vpop.permute.xlu0 %2131  ;;  %v2152_v63 = vpop.permute.xlu1 %2151 }
 0x14c   : > { %v2134_v38 = vunpack.i.h.bf16 %v2132_v35  ;;  %v2133_v29 = vunpack.i.l.bf16 %v2132_v35  ;;  %v2153_v28 = vunpack.i.l.bf16 %v2152_v63 }
 0x14e   : > { %v893_v17 = vsel %vm884_vm4, %v876_v39, %v2133_v29  ;;  %v894_v59 = vsel %vm884_vm4, %v877_v40, %v2134_v38  ;;  %v491_v38 = vrot.slane %v2749_v5, 7  ;;  %v2935_v29 = vpop.permute.xlu2 %586 }
 0x14f   : > { %v905_v7 = vpack.c.bf16 %v894_v59, %v893_v17 }
 0x150   : > { %v500_v40 = vsel %vm497_vm1, %v491_v38, %v492_v53  ;;  %v501_v13 = vsel %vm497_vm1, %v490_v30, %v491_v38  ;;  %v608_v53 = vmul.f32 %v2935_v29, %v2746_v3 }
 0x151   : > { %1938 = vmatmul.msk.bf16.gmra.mxu0 %vm920_vm5, %v905_v7  ;;  %v607_v47 = vmul.f32 %v2925_v26, %v500_v40  ;;  %v606_v5 = vmul.f32 %v2917_v48, %v501_v13 }
 0x153   : > { %v2919_v54 = vpop.permute.xlu0 %566  ;;  %v2157_v17 = vpop.permute.xlu1 %2156 }
 0x154   : > { %v604_v44 = vmul.f32 %v2919_v54, %v503_v11  ;;  %v2158_v31 = vunpack.i.l.bf16 %v2157_v17 }
 0x156   : > { %v878_v9 = vsel %vm867_vm3, %v604_v44, %v2138_v14  ;;  %v2162_v30 = vpop.permute.xlu2 %2161  ;;  %v2154_v14 = vunpack.i.h.bf16 %v2152_v63  ;;  %v2159_v44 = vunpack.i.h.bf16 %v2157_v17 }
 0x15b   : > { %v2142_v45 = vpop.permute.xlu0 %2141 }
 0x15c   : > { %v2144_v24 = vunpack.i.h.bf16 %v2142_v45  ;;  %v2143_v8 = vunpack.i.l.bf16 %v2142_v45 }
 0x15e   : > { %v895_v37 = vsel %vm884_vm4, %v878_v9, %v2143_v8  ;;  %v896_v23 = vsel %vm884_vm4, %v879_v61, %v2144_v24  ;;  %v882_v24 = vsel %vm867_vm3, %v608_v53, %v2158_v31  ;;  %v2164_v9 = vunpack.i.h.bf16 %v2162_v30 }
 0x15f   : > { %v906_v35 = vpack.c.bf16 %v896_v23, %v895_v37  ;;  %v2163_v61 = vunpack.i.l.bf16 %v2162_v30 }
 0x161   : > { %1939 = vmatmul.msk.bf16.gmra.mxu0 %vm920_vm5, %v906_v35  ;;  %v899_v3 = vsel %vm884_vm4, %v882_v24, %v2163_v61  ;;  %v2969_v35 = vld [vmem:[%s3546_s5] ss:$0 sm:$0xff] }
 0x163   : > { %v2147_v39 = vpop.permute.xlu0 %2146 }
 0x164   : > { %v2149_v59 = vunpack.i.h.bf16 %v2147_v39  ;;  %v2148_v7 = vunpack.i.l.bf16 %v2147_v39 }
 0x166   : > { %v881_v11 = vsel %vm867_vm3, %v607_v47, %v2149_v59  ;;  %v880_v27 = vsel %vm867_vm3, %v606_v5, %v2148_v7 }
 0x167   : > { %v897_v50 = vsel %vm884_vm4, %v880_v27, %v2153_v28  ;;  %v898_v52 = vsel %vm884_vm4, %v881_v11, %v2154_v14 }
 0x168   : > { %v907_v20 = vpack.c.bf16 %v898_v52, %v897_v50 }
 0x16b   : > { %v2955_v45 = vpop.permute.xlu0 %591 }
 0x16c   : > { %v609_v8 = vmul.f32 %v2955_v45, %v498_v51 }
 0x16e   : > { %v883_v58 = vsel %vm867_vm3, %v609_v8, %v2159_v44 }
 0x16f   : > { %v900_v63 = vsel %vm884_vm4, %v883_v58, %v2164_v9 }
 0x170   : > { %v908_v37 = vpack.c.bf16 %v900_v63, %v899_v3 }
 0x171   : > { %1940 = vmatmul.msk.bf16.gmra.mxu0 %vm920_vm5, %v907_v20 }
 0x181   : > { %1941 = vmatmul.msk.bf16.gmra.mxu0 %vm920_vm5, %v908_v37 }
 0x18e   : > { %v958_v23 = vpop.f32.mrf.mxu0 }
 0x18f   : > { %v959_v38 = vadd.f32 %v2969_v35, %v958_v23 }
 0x191   : > { %v2973_v13 = vmax.f32 %v959_v38, 0.0 }
 0x193   : > { %3571 = vst [vmem:[#allocation7_spill] sm:$0xff] %v2973_v13  ;;  %v1062_v31 = vrot.slane %v2973_v13, 1 }
 0x196   : > { %v960_v39 = vpop.f32.mrf.mxu0 }
 0x197   : > { %v961_v40 = vadd.f32 %v2969_v35, %v960_v39 }
 0x199   : > { %v2975_v17 = vmax.f32 %v961_v40, 0.0 }
 0x19b   : > { %3572 = vst [vmem:[#allocation8_spill] sm:$0xff] %v2975_v17  ;;  %v2165_v59 = vpack.i.bf16 %v2975_v17, %v2973_v13  ;;  %v1063_v47 = vrot.slane %v2975_v17, 1 }
 0x19d   : > { %2166 = vrot.lane.b32.xlu0 %v2165_v59, %s2396_s29  ;;  %v1092_v51 = vsel %vm626_vm0, %v1062_v31, %v1063_v47 }
 0x19e   : > { %v963_v7 = vpop.f32.mrf.mxu0  ;;  %v1094_v14 = vmul.f32 %v1092_v51, %v2653_v57 }
 0x19f   : > { %v964_v5 = vadd.f32 %v2969_v35, %v963_v7 }
 0x1a1   : > { %v2983_v11 = vmax.f32 %v964_v5, 0.0 }
 0x1a3   : > { %v1064_v27 = vrot.slane %v2983_v11, 1 }
 0x1a5   : > { %v1091_v53 = vsel %vm626_vm0, %v1063_v47, %v1064_v27 }
 0x1a6   : > { %v965_v30 = vpop.f32.mrf.mxu0  ;;  %v1095_v28 = vmul.f32 %v1091_v53, %v2669_v1 }
 0x1a7   : > { %v966_v44 = vadd.f32 %v2969_v35, %v965_v30 }
 0x1a8   : > { %v2170_v24 = vpack.i.bf16 %v1095_v28, %v1094_v14 }
 0x1a9   : > { %v2995_v8 = vmax.f32 %v966_v44, 0.0 }
 0x1aa   : > { %2171 = vrot.lane.b32.xlu1 %v2170_v24, %s2397_s15 }
 0x1ab   : > { %3573 = vst [vmem:[#allocation9_spill] sm:$0xff] %v2995_v8  ;;  %v2175_v50 = vpack.i.bf16 %v2995_v8, %v2983_v11  ;;  %v1065_v9 = vrot.slane %v2995_v8, 1 }
 0x1ad   : > { %2176 = vrot.lane.b32.xlu2 %v2175_v50, %s2396_s29  ;;  %v1090_v3 = vsel %vm626_vm0, %v1064_v27, %v1065_v9 }
 0x1ae   : > { %v968_v52 = vpop.f32.mrf.mxu0  ;;  %v1096_v23 = vmul.f32 %v1090_v3, %v2651_v56 }
 0x1af   : > { %v969_v61 = vadd.f32 %v2969_v35, %v968_v52 }
 0x1b1   : > { %v3003_v58 = vmax.f32 %v969_v61, 0.0 }
 0x1b3   : > { %v1066_v20 = vrot.slane %v3003_v58, 1 }
 0x1b5   : > { %v1089_v63 = vsel %vm626_vm0, %v1065_v9, %v1066_v20 }
 0x1b6   : > { %v970_v37 = vpop.f32.mrf.mxu0  ;;  %v1097_v38 = vmul.f32 %v1089_v63, %v2667_v0 }
 0x1b7   : > { %v971_v39 = vadd.f32 %v2969_v35, %v970_v37 }
 0x1b8   : > { %v2180_v40 = vpack.i.bf16 %v1097_v38, %v1096_v23 }
 0x1b9   : > { %v3013_v59 = vmax.f32 %v971_v39, 0.0 }
 0x1ba   : > { %2181 = vrot.lane.b32.xlu0 %v2180_v40, %s2397_s15 }
 0x1bb   : > { %v2185_v7 = vpack.i.bf16 %v3013_v59, %v3003_v58  ;;  %v1067_v5 = vrot.slane %v3013_v59, 1 }
 0x1bd   : > { %2186 = vrot.lane.b32.xlu1 %v2185_v7, %s2396_s29  ;;  %v1088_v30 = vsel %vm626_vm0, %v1066_v20, %v1067_v5 }
 0x1be   : > { %v973_v47 = vpop.f32.mrf.mxu0  ;;  %v1098_v44 = vmul.f32 %v1088_v30, %v2628_v46 }
 0x1bf   : > { %v974_v27 = vadd.f32 %v2969_v35, %v973_v47 }
 0x1c1   : > { %v3021_v51 = vmax.f32 %v974_v27, 0.0 }
 0x1c3   : > { %v1068_v53 = vrot.slane %v3021_v51, 1 }
 0x1c5   : > { %v1087_v14 = vsel %vm626_vm0, %v1067_v5, %v1068_v53 }
 0x1c6   : > { %v975_v28 = vpop.f32.mrf.mxu0  ;;  %v1099_v24 = vmul.f32 %v1087_v14, %v2636_v49 }
 0x1c7   : > { %v976_v50 = vadd.f32 %v2969_v35, %v975_v28 }
 0x1c8   : > { %v2190_v52 = vpack.i.bf16 %v1099_v24, %v1098_v44 }
 0x1c9   : > { %v3031_v9 = vmax.f32 %v976_v50, 0.0 }
 0x1ca   : > { %2191 = vrot.lane.b32.xlu2 %v2190_v52, %s2397_s15 }
 0x1cb   : > { %v2195_v61 = vpack.i.bf16 %v3031_v9, %v3021_v51  ;;  %v1069_v3 = vrot.slane %v3031_v9, 1 }
 0x1cd   : > { %2196 = vrot.lane.b32.xlu0 %v2195_v61, %s2396_s29  ;;  %v1086_v38 = vsel %vm626_vm0, %v1068_v53, %v1069_v3 }
 0x1ce   : > { %v978_v20 = vpop.f32.mrf.mxu0  ;;  %v1100_v7 = vmul.f32 %v1086_v38, %v2689_v18 }
 0x1cf   : > { %v979_v63 = vadd.f32 %v2969_v35, %v978_v20 }
 0x1d1   : > { %v3039_v37 = vmax.f32 %v979_v63, 0.0 }
 0x1d3   : > { %3574 = vst [vmem:[#allocation10_spill] sm:$0xff] %v3039_v37  ;;  %v1070_v23 = vrot.slane %v3039_v37, 1 }
 0x1d5   : > { %v1085_v39 = vsel %vm626_vm0, %v1069_v3, %v1070_v23 }
 0x1d6   : > { %v980_v40 = vpop.f32.mrf.mxu0  ;;  %v1101_v47 = vmul.f32 %v1085_v39, %v2663_v62 }
 0x1d7   : > { %v981_v5 = vadd.f32 %v2969_v35, %v980_v40 }
 0x1d8   : > { %v2200_v27 = vpack.i.bf16 %v1101_v47, %v1100_v7 }
 0x1d9   : > { %v3049_v30 = vmax.f32 %v981_v5, 0.0 }
 0x1da   : > { %2201 = vrot.lane.b32.xlu1 %v2200_v27, %s2397_s15 }
 0x1db   : > { %3575 = vst [vmem:[#allocation11_spill] sm:$0xff] %v3049_v30  ;;  %v2205_v14 = vpack.i.bf16 %v3049_v30, %v3039_v37  ;;  %v1071_v28 = vrot.slane %v3049_v30, 1 }
 0x1dd   : > { %2206 = vrot.lane.b32.xlu2 %v2205_v14, %s2396_s29  ;;  %v1084_v52 = vsel %vm626_vm0, %v1070_v23, %v1071_v28  ;;  %v1994_v14 = vld [vmem:[%s3547_s6 + $0x10] sm:$0xff] }
 0x1de   : > { %v983_v53 = vpop.f32.mrf.mxu0  ;;  %v1102_v3 = vmul.f32 %v1084_v52, %v2709_v34  ;;  %1338 = vmatpush.bf16.msra.mxu1 %v1994_v14 }
 0x1df   : > { %v984_v44 = vadd.f32 %v2969_v35, %v983_v53 }
 0x1e1   : > { %v3057_v24 = vmax.f32 %v984_v44, 0.0  ;;  %v1993_v44 = vld [vmem:[%s3547_s6 + $0x8] sm:$0xff] }
 0x1e2   : > { %1339 = vmatpush.bf16.msra.mxu1 %v1993_v44 }
 0x1e3   : > { %v1072_v50 = vrot.slane %v3057_v24, 1 }
 0x1e5   : > { %v1083_v61 = vsel %vm626_vm0, %v1071_v28, %v1072_v50 }
 0x1e6   : > { %v985_v20 = vpop.f32.mrf.mxu0  ;;  %v1103_v63 = vmul.f32 %v1083_v61, %v2691_v19 }
 0x1e7   : > { %v986_v38 = vadd.f32 %v2969_v35, %v985_v20 }
 0x1e8   : > { %v2210_v39 = vpack.i.bf16 %v1103_v63, %v1102_v3 }
 0x1e9   : > { %v3067_v40 = vmax.f32 %v986_v38, 0.0 }
 0x1ea   : > { %2211 = vrot.lane.b32.xlu0 %v2210_v39, %s2397_s15 }
 0x1eb   : > { %v2215_v7 = vpack.i.bf16 %v3067_v40, %v3057_v24  ;;  %v1073_v47 = vrot.slane %v3067_v40, 1 }
 0x1ed   : > { %2216 = vrot.lane.b32.xlu1 %v2215_v7, %s2396_s29  ;;  %v1082_v28 = vsel %vm626_vm0, %v1072_v50, %v1073_v47  ;;  %v1992_v7 = vld [vmem:[%s3547_s6] sm:$0xff] }
 0x1ee   : > { %v988_v23 = vpop.f32.mrf.mxu0  ;;  %v1104_v20 = vmul.f32 %v1082_v28, %v2738_v2  ;;  %1340 = vmatpush.bf16.msra.mxu1 %v1992_v7 }
 0x1ef   : > { %v989_v5 = vadd.f32 %v2969_v35, %v988_v23 }
 0x1f1   : > { %v3075_v27 = vmax.f32 %v989_v5, 0.0 }
 0x1f3   : > { %v1074_v53 = vrot.slane %v3075_v27, 1 }
 0x1f5   : > { %v1081_v52 = vsel %vm626_vm0, %v1073_v47, %v1074_v53 }
 0x1f6   : > { %v990_v61 = vpop.f32.mrf.mxu0  ;;  %v1105_v3 = vmul.f32 %v1081_v52, %v2712_v36 }
 0x1f7   : > { %v991_v63 = vadd.f32 %v2969_v35, %v990_v61 }
 0x1f8   : > { %v2220_v38 = vpack.i.bf16 %v1105_v3, %v1104_v20 }
 0x1f9   : > { %v3091_v39 = vmax.f32 %v991_v63, 0.0 }
 0x1fa   : > { %2221 = vrot.lane.b32.xlu2 %v2220_v38, %s2397_s15 }
 0x1fb   : > { %v2225_v50 = vpack.i.bf16 %v3091_v39, %v3075_v27  ;;  %v1075_v47 = vrot.slane %v3091_v39, 1 }
 0x1fd   : > { %2226 = vrot.lane.b32.xlu0 %v2225_v50, %s2396_s29  ;;  %v1080_v44 = vsel %vm626_vm0, %v1074_v53, %v1075_v47 }
 0x1fe   : > { %v993_v23 = vpop.f32.mrf.mxu0  ;;  %v1106_v20 = vmul.f32 %v1080_v44, %v2772_v33 }
 0x1ff   : > { %v994_v5 = vadd.f32 %v2969_v35, %v993_v23 }
 0x201   : > { %v3102_v14 = vmax.f32 %v994_v5, 0.0 }
 0x203   : > { %v1076_v28 = vrot.slane %v3102_v14, 1 }
 0x205   : > { %v1079_v52 = vsel %vm626_vm0, %v1075_v47, %v1076_v28 }
 0x206   : > { %v995_v61 = vpop.f32.mrf.mxu0  ;;  %v1107_v3 = vmul.f32 %v1079_v52, %v2757_v15  ;;  %v1015_v52 = vrot.slane %v2975_v17, 7 }
 0x207   : > { %v996_v63 = vadd.f32 %v2969_v35, %v995_v61 }
 0x208   : > { %v2230_v38 = vpack.i.bf16 %v1107_v3, %v1106_v20  ;;  %v1014_v20 = vrot.slane %v2973_v13, 7 }
 0x209   : > { %v3112_v50 = vmax.f32 %v996_v63, 0.0 }
 0x20a   : > { %2231 = vrot.lane.b32.xlu1 %v2230_v38, %s2397_s15 }
 0x20b   : > { %v1077_v7 = vrot.slane %v3112_v50, 1  ;;  %v2235_v53 = vpack.i.bf16 %v3112_v50, %v3102_v14  ;;  %v3557_v61 = vrot.slane %v3112_v50, 7 }
 0x20d   : > { %2236 = vrot.lane.b32.xlu2 %v2235_v53, %s2396_s29  ;;  %v1078_v23 = vsel %vm626_vm0, %v1076_v28, %v1077_v7  ;;  %v1093_v35 = vsel %vm626_vm0, %v1077_v7, %v1062_v31  ;;  %v1044_v28 = vsel %vm497_vm1, %v1014_v20, %v1015_v52  ;;  %v1045_v31 = vsel %vm497_vm1, %v3557_v61, %v1014_v20 }
 0x20e   : > { %v1108_v47 = vmul.f32 %v1078_v23, %v2806_v32  ;;  %v1109_v5 = vmul.f32 %v1093_v35, %v2797_v25  ;;  %v1046_v7 = vmul.f32 %v1045_v31, %v2828_v43  ;;  %v1047_v53 = vmul.f32 %v1044_v28, %v2678_v10  ;;  %v2177_v31 = vpop.permute.xlu2 %2176 }
 0x20f   : > { %v2167_v3 = vpop.permute.xlu0 %2166  ;;  %v1017_v28 = vrot.slane %v2995_v8, 7 }
 0x210   : > { %v2240_v44 = vpack.i.bf16 %v1109_v5, %v1108_v47  ;;  %v2169_v63 = vunpack.i.h.bf16 %v2167_v3  ;;  %v2168_v38 = vunpack.i.l.bf16 %v2167_v3  ;;  %v1016_v3 = vrot.slane %v2983_v11, 7 }
 0x212   : > { %2241 = vrot.lane.b32.xlu0 %v2240_v44, %s2397_s15  ;;  %v1239_v5 = vsel %vm1238_vm7, %v1046_v7, %v2168_v38  ;;  %v1240_v44 = vsel %vm1238_vm7, %v1047_v53, %v2169_v63  ;;  %v1043_v38 = vsel %vm497_vm1, %v1015_v52, %v1016_v3  ;;  %v2179_v63 = vunpack.i.h.bf16 %v2177_v31 }
 0x213   : > { %v2178_v7 = vunpack.i.l.bf16 %v2177_v31  ;;  %v1048_v53 = vmul.f32 %v1043_v38, %v2847_v4  ;;  %v1018_v52 = vrot.slane %v3003_v58, 7 }
 0x215   : > { %v1041_v38 = vsel %vm497_vm1, %v1017_v28, %v1018_v52 }
 0x21c   : > { %v2172_v23 = vpop.permute.xlu1 %2171 }
 0x21d   : > { %v2174_v35 = vunpack.i.h.bf16 %v2172_v23  ;;  %v2173_v47 = vunpack.i.l.bf16 %v2172_v23  ;;  %v1042_v23 = vsel %vm497_vm1, %v1016_v3, %v1017_v28  ;;  %v1019_v3 = vrot.slane %v3013_v59, 7 }
 0x21e   : > { %v1020_v28 = vrot.slane %v3021_v51, 7 }
 0x21f   : > { %v1256_v17 = vsel %vm1255_vm6, %v1239_v5, %v2173_v47  ;;  %v1257_v13 = vsel %vm1255_vm6, %v1240_v44, %v2174_v35  ;;  %v1049_v35 = vmul.f32 %v1042_v23, %v2695_v22  ;;  %v1241_v5 = vsel %vm1238_vm7, %v1048_v53, %v2178_v7 }
 0x220   : > { %v1272_v20 = vpack.c.bf16 %v1257_v13, %v1256_v17  ;;  %v1040_v23 = vsel %vm497_vm1, %v1018_v52, %v1019_v3  ;;  %v1021_v52 = vrot.slane %v3031_v9, 7 }
 0x221   : > { %v1242_v44 = vsel %vm1238_vm7, %v1049_v35, %v2179_v63  ;;  %v1050_v35 = vmul.f32 %v1041_v38, %v2864_v42  ;;  %v1039_v38 = vsel %vm497_vm1, %v1019_v3, %v1020_v28  ;;  %v1022_v3 = vrot.slane %v3039_v37, 7 }
 0x222   : > { %1954 = vmatmul.msk.bf16.vlgmr.msra.gmra.mxu1 %vm1308_vm8, %v1272_v20 }
 0x224   : > { %v2192_v53 = vpop.permute.xlu2 %2191 }
 0x22c   : > { %v2182_v13 = vpop.permute.xlu0 %2181 }
 0x22d   : > { %v2184_v17 = vunpack.i.h.bf16 %v2182_v13  ;;  %v2183_v47 = vunpack.i.l.bf16 %v2182_v13 }
 0x22f   : > { %v1258_v20 = vsel %vm1255_vm6, %v1241_v5, %v2183_v47  ;;  %v1259_v61 = vsel %vm1255_vm6, %v1242_v44, %v2184_v17  ;;  %v2187_v31 = vpop.permute.xlu1 %2186  ;;  %v2194_v47 = vunpack.i.h.bf16 %v2192_v53 }
 0x230   : > { %v1273_v8 = vpack.c.bf16 %v1259_v61, %v1258_v20  ;;  %v2189_v7 = vunpack.i.h.bf16 %v2187_v31  ;;  %v2188_v63 = vunpack.i.l.bf16 %v2187_v31  ;;  %v1051_v61 = vmul.f32 %v1040_v23, %v2716_v41 }
 0x231   : > { %v1038_v23 = vsel %vm497_vm1, %v1020_v28, %v1021_v52  ;;  %v1023_v28 = vrot.slane %v3049_v30, 7 }
 0x232   : > { %1955 = vmatmul.msk.bf16.gmra.mxu1 %vm1308_vm8, %v1273_v8  ;;  %v1244_v13 = vsel %vm1238_vm7, %v1051_v61, %v2189_v7  ;;  %v1243_v17 = vsel %vm1238_vm7, %v1050_v35, %v2188_v63  ;;  %v2193_v8 = vunpack.i.l.bf16 %v2192_v53  ;;  %v1052_v53 = vmul.f32 %v1039_v38, %v2881_v21 }
 0x233   : > { %v1261_v44 = vsel %vm1255_vm6, %v1244_v13, %v2194_v47  ;;  %v1053_v35 = vmul.f32 %v1038_v23, %v2751_v6  ;;  %v1036_v23 = vsel %vm497_vm1, %v1022_v3, %v1023_v28  ;;  %v1037_v38 = vsel %vm497_vm1, %v1021_v52, %v1022_v3 }
 0x234   : > { %v1260_v5 = vsel %vm1255_vm6, %v1243_v17, %v2193_v8  ;;  %v1024_v52 = vrot.slane %v3057_v24, 7  ;;  %v1025_v3 = vrot.slane %v3067_v40, 7 }
 0x235   : > { %v1274_v20 = vpack.c.bf16 %v1261_v44, %v1260_v5 }
 0x23f   : > { %v2197_v31 = vpop.permute.xlu0 %2196 }
 0x240   : > { %v2199_v7 = vunpack.i.h.bf16 %v2197_v31  ;;  %v2198_v63 = vunpack.i.l.bf16 %v2197_v31  ;;  %v2207_v31 = vpop.permute.xlu2 %2206 }
 0x242   : > { %1956 = vmatmul.msk.bf16.gmra.mxu1 %vm1308_vm8, %v1274_v20  ;;  %v1246_v47 = vsel %vm1238_vm7, %v1053_v35, %v2199_v7  ;;  %v1245_v8 = vsel %vm1238_vm7, %v1052_v53, %v2198_v63  ;;  %v2209_v7 = vunpack.i.h.bf16 %v2207_v31  ;;  %v2208_v63 = vunpack.i.l.bf16 %v2207_v31 }
 0x243   : > { %v1054_v53 = vmul.f32 %v1037_v38, %v2898_v12  ;;  %v1055_v35 = vmul.f32 %v1036_v23, %v2783_v60  ;;  %v1034_v23 = vsel %vm497_vm1, %v1024_v52, %v1025_v3  ;;  %v1035_v38 = vsel %vm497_vm1, %v1023_v28, %v1024_v52 }
 0x244   : > { %v1026_v28 = vrot.slane %v3075_v27, 7  ;;  %v1027_v52 = vrot.slane %v3091_v39, 7 }
 0x24c   : > { %v2202_v61 = vpop.permute.xlu1 %2201 }
 0x24d   : > { %v2204_v13 = vunpack.i.h.bf16 %v2202_v61  ;;  %v2203_v17 = vunpack.i.l.bf16 %v2202_v61 }
 0x24f   : > { %v1262_v5 = vsel %vm1255_vm6, %v1245_v8, %v2203_v17  ;;  %v1263_v44 = vsel %vm1255_vm6, %v1246_v47, %v2204_v13  ;;  %v1248_v47 = vsel %vm1238_vm7, %v1055_v35, %v2209_v7  ;;  %v1247_v8 = vsel %vm1238_vm7, %v1054_v53, %v2208_v63 }
 0x250   : > { %v1275_v20 = vpack.c.bf16 %v1263_v44, %v1262_v5  ;;  %v1056_v35 = vmul.f32 %v1035_v38, %v2919_v54  ;;  %v1033_v38 = vsel %vm497_vm1, %v1025_v3, %v1026_v28  ;;  %v1028_v3 = vrot.slane %v3102_v14, 7 }
 0x252   : > { %1957 = vmatmul.msk.bf16.gmra.mxu1 %vm1308_vm8, %v1275_v20 }
 0x254   : > { %v2222_v53 = vpop.permute.xlu2 %2221 }
 0x25c   : > { %v2212_v61 = vpop.permute.xlu0 %2211 }
 0x25d   : > { %v2214_v13 = vunpack.i.h.bf16 %v2212_v61  ;;  %v2213_v17 = vunpack.i.l.bf16 %v2212_v61  ;;  %v1057_v61 = vmul.f32 %v1034_v23, %v2906_v16  ;;  %v1032_v23 = vsel %vm497_vm1, %v1026_v28, %v1027_v52 }
 0x25f   : > { %v1264_v5 = vsel %vm1255_vm6, %v1247_v8, %v2213_v17  ;;  %v1265_v44 = vsel %vm1255_vm6, %v1248_v47, %v2214_v13  ;;  %v2217_v31 = vpop.permute.xlu1 %2216  ;;  %v2224_v47 = vunpack.i.h.bf16 %v2222_v53  ;;  %v2223_v8 = vunpack.i.l.bf16 %v2222_v53 }
 0x260   : > { %v1276_v20 = vpack.c.bf16 %v1265_v44, %v1264_v5  ;;  %v2219_v7 = vunpack.i.h.bf16 %v2217_v31  ;;  %v2218_v63 = vunpack.i.l.bf16 %v2217_v31  ;;  %v1058_v53 = vmul.f32 %v1033_v38, %v2917_v48 }
 0x262   : > { %1958 = vmatmul.msk.bf16.gmra.mxu1 %vm1308_vm8, %v1276_v20  ;;  %v1250_v13 = vsel %vm1238_vm7, %v1057_v61, %v2219_v7  ;;  %v1249_v17 = vsel %vm1238_vm7, %v1056_v35, %v2218_v63  ;;  %v1059_v35 = vmul.f32 %v1032_v23, %v2925_v26  ;;  %v3576_v23 = vrot.slane %v3112_v50, 7 }
 0x263   : > { %v1266_v5 = vsel %vm1255_vm6, %v1249_v17, %v2223_v8  ;;  %v1267_v44 = vsel %vm1255_vm6, %v1250_v13, %v2224_v47 }
 0x264   : > { %v1277_v20 = vpack.c.bf16 %v1267_v44, %v1266_v5  ;;  %v1030_v38 = vsel %vm497_vm1, %v1028_v3, %v3576_v23 }
 0x267   : > { %v2237_v28 = vpop.permute.xlu2 %2236 }
 0x26f   : > { %v2227_v31 = vpop.permute.xlu0 %2226 }
 0x270   : > { %v2229_v7 = vunpack.i.h.bf16 %v2227_v31  ;;  %v2228_v63 = vunpack.i.l.bf16 %v2227_v31 }
 0x272   : > { %1959 = vmatmul.msk.bf16.gmra.mxu1 %vm1308_vm8, %v1277_v20  ;;  %v1252_v47 = vsel %vm1238_vm7, %v1059_v35, %v2229_v7  ;;  %v1251_v8 = vsel %vm1238_vm7, %v1058_v53, %v2228_v63  ;;  %v1031_v7 = vsel %vm497_vm1, %v1027_v52, %v1028_v3  ;;  %v2239_v63 = vunpack.i.h.bf16 %v2237_v28  ;;  %v3239_v3 = vld [vmem:[%s3548_s7] ss:$0 sm:$0xff] }
 0x273   : > { %v2238_v53 = vunpack.i.l.bf16 %v2237_v28 }
 0x27c   : > { %v2232_v61 = vpop.permute.xlu1 %2231 }
 0x27d   : > { %v2234_v13 = vunpack.i.h.bf16 %v2232_v61  ;;  %v2233_v17 = vunpack.i.l.bf16 %v2232_v61 }
 0x27f   : > { %v1268_v5 = vsel %vm1255_vm6, %v1251_v8, %v2233_v17  ;;  %v1269_v44 = vsel %vm1255_vm6, %v1252_v47, %v2234_v13  ;;  %v1060_v13 = vmul.f32 %v1031_v7, %v2935_v29  ;;  %v1061_v17 = vmul.f32 %v1030_v38, %v2955_v45 }
 0x280   : > { %v1278_v20 = vpack.c.bf16 %v1269_v44, %v1268_v5 }
 0x281   : > { %v1254_v47 = vsel %vm1238_vm7, %v1061_v17, %v2239_v63  ;;  %v1253_v8 = vsel %vm1238_vm7, %v1060_v13, %v2238_v53 }
 0x282   : > { %1960 = vmatmul.msk.bf16.gmra.mxu1 %vm1308_vm8, %v1278_v20 }
 0x284   : > { %v2242_v31 = vpop.permute.xlu0 %2241 }
 0x285   : > { %v2244_v35 = vunpack.i.h.bf16 %v2242_v31  ;;  %v2243_v61 = vunpack.i.l.bf16 %v2242_v31 }
 0x287   : > { %v1270_v5 = vsel %vm1255_vm6, %v1253_v8, %v2243_v61  ;;  %v1271_v44 = vsel %vm1255_vm6, %v1254_v47, %v2244_v35 }
 0x288   : > { %v1279_v20 = vpack.c.bf16 %v1271_v44, %v1270_v5 }
 0x292   : > { %1961 = vmatmul.msk.bf16.gmra.mxu1 %vm1308_vm8, %v1279_v20 }
 0x29f   : > { %v1342_v52 = vpop.f32.mrf.mxu1 }
 0x2a0   : > { %v1343_v28 = vadd.f32 %v3239_v3, %v1342_v52 }
 0x2a2   : > { %v3242_v23 = vmax.f32 %v1343_v28, 0.0 }
 0x2a4   : > { %v3559_v63 = vrot.slane %v3242_v23, 7  ;;  %v3561_v8 = vrot.slane %v3242_v23, 1 }
 0x2a7   : > { %v1344_v31 = vpop.f32.mrf.mxu1 }
 0x2a8   : > { %v1345_v38 = vadd.f32 %v3239_v3, %v1344_v31 }
 0x2aa   : > { %v1383_v7 = vmax.f32 %v1345_v38, 0.0 }
 0x2ac   : > { %v1399_v53 = vrot.slane %v1383_v7, 7  ;;  %v2245_v35 = vpack.i.bf16 %v1383_v7, %v3242_v23  ;;  %v1447_v17 = vrot.slane %v1383_v7, 1 }
 0x2ae   : > { %v3251_v61 = vsel %vm497_vm1, %v3559_v63, %v1399_v53  ;;  %2246 = vrot.lane.b32.xlu1 %v2245_v35, %s2396_s29  ;;  %v1476_v52 = vsel %vm626_vm0, %v3561_v8, %v1447_v17 }
 0x2af   : > { %v1347_v13 = vpop.f32.mrf.mxu1  ;;  %v1478_v7 = vmul.f32 %v1476_v52, %v2653_v57 }
 0x2b0   : > { %v1348_v47 = vadd.f32 %v3239_v3, %v1347_v13 }
 0x2b2   : > { %v1384_v5 = vmax.f32 %v1348_v47, 0.0 }
 0x2b4   : > { %v1400_v44 = vrot.slane %v1384_v5, 7  ;;  %v1448_v20 = vrot.slane %v1384_v5, 1 }
 0x2b6   : > { %v3262_v28 = vsel %vm497_vm1, %v1399_v53, %v1400_v44  ;;  %v1475_v31 = vsel %vm626_vm0, %v1447_v17, %v1448_v20 }
 0x2b7   : > { %v1349_v38 = vpop.f32.mrf.mxu1  ;;  %v1479_v35 = vmul.f32 %v1475_v31, %v2669_v1 }
 0x2b8   : > { %v1350_v13 = vadd.f32 %v3239_v3, %v1349_v38 }
 0x2b9   : > { %v2250_v47 = vpack.i.bf16 %v1479_v35, %v1478_v7 }
 0x2ba   : > { %v1385_v63 = vmax.f32 %v1350_v13, 0.0 }
 0x2bb   : > { %2251 = vrot.lane.b32.xlu2 %v2250_v47, %s2397_s15 }
 0x2bc   : > { %v1401_v37 = vrot.slane %v1385_v63, 7  ;;  %v2255_v8 = vpack.i.bf16 %v1385_v63, %v1384_v5  ;;  %v1449_v30 = vrot.slane %v1385_v63, 1 }
 0x2be   : > { %v3272_v53 = vsel %vm497_vm1, %v1400_v44, %v1401_v37  ;;  %2256 = vrot.lane.b32.xlu0 %v2255_v8, %s2396_s29  ;;  %v1474_v38 = vsel %vm626_vm0, %v1448_v20, %v1449_v30 }
 0x2bf   : > { %v1352_v17 = vpop.f32.mrf.mxu1  ;;  %v1480_v8 = vmul.f32 %v1474_v38, %v2651_v56 }
 0x2c0   : > { %v1353_v57 = vadd.f32 %v3239_v3, %v1352_v17 }
 0x2c2   : > { %v1386_v52 = vmax.f32 %v1353_v57, 0.0 }
 0x2c4   : > { %v1402_v1 = vrot.slane %v1386_v52, 7  ;;  %v1450_v31 = vrot.slane %v1386_v52, 1 }
 0x2c6   : > { %v3280_v7 = vsel %vm497_vm1, %v1401_v37, %v1402_v1  ;;  %v1473_v5 = vsel %vm626_vm0, %v1449_v30, %v1450_v31 }
 0x2c7   : > { %v1354_v44 = vpop.f32.mrf.mxu1  ;;  %v1481_v63 = vmul.f32 %v1473_v5, %v2667_v0 }
 0x2c8   : > { %v1355_v35 = vadd.f32 %v3239_v3, %v1354_v44 }
 0x2c9   : > { %v2260_v13 = vpack.i.bf16 %v1481_v63, %v1480_v8 }
 0x2ca   : > { %v1387_v47 = vmax.f32 %v1355_v35, 0.0 }
 0x2cb   : > { %2261 = vrot.lane.b32.xlu1 %v2260_v13, %s2397_s15 }
 0x2cc   : > { %v1403_v17 = vrot.slane %v1387_v47, 7  ;;  %v2265_v20 = vpack.i.bf16 %v1387_v47, %v1386_v52  ;;  %v1451_v57 = vrot.slane %v1387_v47, 1 }
 0x2ce   : > { %v3290_v37 = vsel %vm497_vm1, %v1402_v1, %v1403_v17  ;;  %2266 = vrot.lane.b32.xlu2 %v2265_v20, %s2396_s29  ;;  %v1472_v44 = vsel %vm626_vm0, %v1450_v31, %v1451_v57 }
 0x2cf   : > { %v1357_v30 = vpop.f32.mrf.mxu1  ;;  %v1482_v63 = vmul.f32 %v1472_v44, %v2628_v46 }
 0x2d0   : > { %v1358_v56 = vadd.f32 %v3239_v3, %v1357_v30 }
 0x2d2   : > { %v1388_v38 = vmax.f32 %v1358_v56, 0.0 }
 0x2d4   : > { %v1404_v0 = vrot.slane %v1388_v38, 7  ;;  %v1452_v5 = vrot.slane %v1388_v38, 1 }
 0x2d6   : > { %v3298_v8 = vsel %vm497_vm1, %v1403_v17, %v1404_v0  ;;  %v1471_v52 = vsel %vm626_vm0, %v1451_v57, %v1452_v5 }
 0x2d7   : > { %v1359_v1 = vpop.f32.mrf.mxu1  ;;  %v1483_v35 = vmul.f32 %v1471_v52, %v2636_v49 }
 0x2d8   : > { %v1360_v13 = vadd.f32 %v3239_v3, %v1359_v1 }
 0x2d9   : > { %v2270_v47 = vpack.i.bf16 %v1483_v35, %v1482_v63 }
 0x2da   : > { %v1389_v20 = vmax.f32 %v1360_v13, 0.0 }
 0x2db   : > { %2271 = vrot.lane.b32.xlu0 %v2270_v47, %s2397_s15 }
 0x2dc   : > { %v1405_v30 = vrot.slane %v1389_v20, 7  ;;  %v2275_v31 = vpack.i.bf16 %v1389_v20, %v1388_v38  ;;  %v1453_v56 = vrot.slane %v1389_v20, 1 }
 0x2de   : > { %v3308_v17 = vsel %vm497_vm1, %v1404_v0, %v1405_v30  ;;  %2276 = vrot.lane.b32.xlu1 %v2275_v31, %s2396_s29  ;;  %v1470_v1 = vsel %vm626_vm0, %v1452_v5, %v1453_v56 }
 0x2df   : > { %v1362_v57 = vpop.f32.mrf.mxu1  ;;  %v1484_v35 = vmul.f32 %v1470_v1, %v2689_v18 }
 0x2e0   : > { %v1363_v46 = vadd.f32 %v3239_v3, %v1362_v57 }
 0x2e2   : > { %v1390_v44 = vmax.f32 %v1363_v46, 0.0 }
 0x2e4   : > { %v1406_v49 = vrot.slane %v1390_v44, 7  ;;  %v1454_v52 = vrot.slane %v1390_v44, 1 }
 0x2e6   : > { %v3316_v63 = vsel %vm497_vm1, %v1405_v30, %v1406_v49  ;;  %v1469_v38 = vsel %vm626_vm0, %v1453_v56, %v1454_v52 }
 0x2e7   : > { %v1364_v0 = vpop.f32.mrf.mxu1  ;;  %v1485_v13 = vmul.f32 %v1469_v38, %v2663_v62 }
 0x2e8   : > { %v1365_v47 = vadd.f32 %v3239_v3, %v1364_v0 }
 0x2e9   : > { %v2280_v20 = vpack.i.bf16 %v1485_v13, %v1484_v35 }
 0x2ea   : > { %v1391_v31 = vmax.f32 %v1365_v47, 0.0 }
 0x2eb   : > { %2281 = vrot.lane.b32.xlu2 %v2280_v20, %s2397_s15 }
 0x2ec   : > { %v1407_v57 = vrot.slane %v1391_v31, 7  ;;  %v2285_v5 = vpack.i.bf16 %v1391_v31, %v1390_v44  ;;  %v1455_v46 = vrot.slane %v1391_v31, 1 }
 0x2ee   : > { %v3326_v30 = vsel %vm497_vm1, %v1406_v49, %v1407_v57  ;;  %2286 = vrot.lane.b32.xlu0 %v2285_v5, %s2396_s29  ;;  %v1468_v0 = vsel %vm626_vm0, %v1454_v52, %v1455_v46  ;;  %v1997_v52 = vld [vmem:[%s3549_s8 + $0x10] sm:$0xff] }
 0x2ef   : > { %v1367_v56 = vpop.f32.mrf.mxu1  ;;  %v1486_v13 = vmul.f32 %v1468_v0, %v2709_v34  ;;  %1719 = vmatpush.bf16.msra.mxu2 %v1997_v52 }
 0x2f0   : > { %v1368_v18 = vadd.f32 %v3239_v3, %v1367_v56 }
 0x2f2   : > { %v1392_v1 = vmax.f32 %v1368_v18, 0.0 }
 0x2f4   : > { %v1408_v62 = vrot.slane %v1392_v1, 7  ;;  %v1456_v38 = vrot.slane %v1392_v1, 1 }
 0x2f6   : > { %v3334_v35 = vsel %vm497_vm1, %v1407_v57, %v1408_v62  ;;  %v1467_v44 = vsel %vm626_vm0, %v1455_v46, %v1456_v38 }
 0x2f7   : > { %v1369_v49 = vpop.f32.mrf.mxu1  ;;  %v1487_v47 = vmul.f32 %v1467_v44, %v2691_v19  ;;  %v1996_v19 = vld [vmem:[%s3549_s8 + $0x8] sm:$0xff] }
 0x2f8   : > { %v1370_v20 = vadd.f32 %v3239_v3, %v1369_v49  ;;  %1720 = vmatpush.bf16.msra.mxu2 %v1996_v19 }
 0x2f9   : > { %v2290_v31 = vpack.i.bf16 %v1487_v47, %v1486_v13 }
 0x2fa   : > { %v1393_v5 = vmax.f32 %v1370_v20, 0.0 }
 0x2fb   : > { %2291 = vrot.lane.b32.xlu1 %v2290_v31, %s2397_s15 }
 0x2fc   : > { %v1409_v57 = vrot.slane %v1393_v5, 7  ;;  %v2295_v56 = vpack.i.bf16 %v1393_v5, %v1392_v1  ;;  %v1457_v18 = vrot.slane %v1393_v5, 1  ;;  %v1995_v1 = vld [vmem:[%s3549_s8] sm:$0xff] }
 0x2fd   : > { %1721 = vmatpush.bf16.msra.mxu2 %v1995_v1 }
 0x2fe   : > { %v3347_v46 = vsel %vm497_vm1, %v1408_v62, %v1409_v57  ;;  %2296 = vrot.lane.b32.xlu2 %v2295_v56, %s2396_s29  ;;  %v1466_v62 = vsel %vm626_vm0, %v1456_v38, %v1457_v18 }
 0x2ff   : > { %v1372_v34 = vpop.f32.mrf.mxu1  ;;  %v1488_v5 = vmul.f32 %v1466_v62, %v2738_v2 }
 0x300   : > { %v1373_v0 = vadd.f32 %v3239_v3, %v1372_v34 }
 0x302   : > { %v1394_v44 = vmax.f32 %v1373_v0, 0.0 }
 0x304   : > { %v1410_v49 = vrot.slane %v1394_v44, 7  ;;  %v1458_v13 = vrot.slane %v1394_v44, 1 }
 0x306   : > { %v3361_v47 = vsel %vm497_vm1, %v1409_v57, %v1410_v49  ;;  %v1465_v20 = vsel %vm626_vm0, %v1457_v18, %v1458_v13 }
 0x307   : > { %v1374_v31 = vpop.f32.mrf.mxu1  ;;  %v1489_v52 = vmul.f32 %v1465_v20, %v2712_v36 }
 0x308   : > { %v1375_v56 = vadd.f32 %v3239_v3, %v1374_v31 }
 0x309   : > { %v2300_v19 = vpack.i.bf16 %v1489_v52, %v1488_v5 }
 0x30a   : > { %v1395_v34 = vmax.f32 %v1375_v56, 0.0 }
 0x30b   : > { %2301 = vrot.lane.b32.xlu0 %v2300_v19, %s2397_s15 }
 0x30c   : > { %v1411_v38 = vrot.slane %v1395_v34, 7  ;;  %v2305_v0 = vpack.i.bf16 %v1395_v34, %v1394_v44  ;;  %v1459_v1 = vrot.slane %v1395_v34, 1 }
 0x30e   : > { %v3371_v57 = vsel %vm497_vm1, %v1410_v49, %v1411_v38  ;;  %2306 = vrot.lane.b32.xlu1 %v2305_v0, %s2396_s29  ;;  %v1464_v31 = vsel %vm626_vm0, %v1458_v13, %v1459_v1 }
 0x30f   : > { %v1377_v18 = vpop.f32.mrf.mxu1  ;;  %v1490_v52 = vmul.f32 %v1464_v31, %v2772_v33 }
 0x310   : > { %v1378_v2 = vadd.f32 %v3239_v3, %v1377_v18 }
 0x312   : > { %v1396_v62 = vmax.f32 %v1378_v2, 0.0 }
 0x314   : > { %v1412_v36 = vrot.slane %v1396_v62, 7  ;;  %v1460_v20 = vrot.slane %v1396_v62, 1 }
 0x316   : > { %v3379_v5 = vsel %vm497_vm1, %v1411_v38, %v1412_v36  ;;  %v1463_v44 = vsel %vm626_vm0, %v1459_v1, %v1460_v20  ;;  %v3577_v1 = vrot.slane %v3242_v23, 7 }
 0x317   : > { %v1379_v49 = vpop.f32.mrf.mxu1  ;;  %v1491_v56 = vmul.f32 %v1463_v44, %v2757_v15 }
 0x318   : > { %v1380_v19 = vadd.f32 %v3239_v3, %v1379_v49  ;;  %v3578_v3 = vrot.slane %v3242_v23, 1 }
 0x319   : > { %v2310_v34 = vpack.i.bf16 %v1491_v56, %v1490_v52  ;;  %v1431_v52 = vmul.f32 %v3251_v61, %v2678_v10 }
 0x31a   : > { %v1397_v0 = vmax.f32 %v1380_v19, 0.0 }
 0x31b   : > { %2311 = vrot.lane.b32.xlu2 %v2310_v34, %s2397_s15 }
 0x31c   : > { %v1413_v18 = vrot.slane %v1397_v0, 7  ;;  %v1461_v13 = vrot.slane %v1397_v0, 1  ;;  %v2315_v2 = vpack.i.bf16 %v1397_v0, %v1396_v62  ;;  %v2252_v62 = vpop.permute.xlu2 %2251 }
 0x31e   : > { %v3389_v38 = vsel %vm497_vm1, %v1412_v36, %v1413_v18  ;;  %v1429_v33 = vsel %vm497_vm1, %v1413_v18, %v3577_v1  ;;  %2316 = vrot.lane.b32.xlu0 %v2315_v2, %s2396_s29  ;;  %v1462_v15 = vsel %vm626_vm0, %v1460_v20, %v1461_v13  ;;  %v1477_v31 = vsel %vm626_vm0, %v1461_v13, %v3578_v3  ;;  %s1859_s29 = scalar_lea.hbm %s3553_s12, %s1988_s18 }
 0x31f   : > { %v1492_v44 = vmul.f32 %v1462_v15, %v2806_v32  ;;  %v1493_v36 = vmul.f32 %v1477_v31, %v2797_v25  ;;  %v1430_v34 = vmul.f32 %v1429_v33, %v2828_v43  ;;  %v2254_v20 = vunpack.i.h.bf16 %v2252_v62  ;;  %s1863_s30 = sshll.u32 %s1859_s29, 4  ;;  %s1864_s30 = int_to_ptr.hbm [resolvable:$true] %s1863_s30 }
 0x320   : > { %v2247_v49 = vpop.permute.xlu1 %2246  ;;  %v2253_v18 = vunpack.i.l.bf16 %v2252_v62  ;;  %v1432_v43 = vmul.f32 %v3262_v28, %v2847_v4  ;;  %v1433_v1 = vmul.f32 %v3272_v53, %v2695_v22  ;;  %v1434_v22 = vmul.f32 %v3280_v7, %v2864_v42  ;;  %s2343_s0 = sshra.s32 %s1864_s30, 4  ;;  %s2344_s0 = int_to_ptr.hbm [resolvable:$true] %s2343_s0 }
 0x321   : > { %v2249_v56 = vunpack.i.h.bf16 %v2247_v49  ;;  %v2248_v19 = vunpack.i.l.bf16 %v2247_v49  ;;  %v2320_v0 = vpack.i.bf16 %v1493_v36, %v1492_v44  ;;  %v1435_v28 = vmul.f32 %v3290_v37, %v2716_v41  ;;  %s2345_s1 = scalar_lea.hbm %s2344_s0, 8  ;;  %p2350_p0 = scmp.lt.s32.totalorder %s2344_s0, %s3553_s12 }
 0x322   : > { %v1437_v42 = vmul.f32 %v3308_v17, %v2751_v6  ;;  %p2346_p11 = scmp.ne.s32.totalorder %s2344_s0, %s2345_s1  ;;  %p2351_p1 = scmp.lt.s32.totalorder %s2349_s19, %s2345_s1 }
 0x323   : > { %v1622_v23 = vsel %vm1238_vm7, %v1430_v34, %v2248_v19  ;;  %v1623_v55 = vsel %vm1238_vm7, %v1431_v52, %v2249_v56  ;;  %2321 = vrot.lane.b32.xlu1 %v2320_v0, %s2397_s15 }
 0x324   : > { %v1638_v32 = vsel %vm1255_vm6, %v1622_v23, %v2253_v18  ;;  %v1639_v25 = vsel %vm1255_vm6, %v1623_v55, %v2254_v20  ;;  %v1436_v23 = vmul.f32 %v3298_v8, %v2881_v21  ;;  %p2347_p12 = pnand %p2346_p11, %p2501_p5  ;;  %p2352_p2 = por %p2351_p1, %p2350_p0 }
 0x325   : > { %v1654_v13 = vpack.c.bf16 %v1639_v25, %v1638_v32 }
 0x326   : > { %p2348_p13 = pneg %p2347_p12 }
 0x327   : > { %1974 = vmatmul.msk.bf16.vlgmr.msra.gmra.mxu2 %vm1308_vm8, %v1654_v13 }
 0x328   : > { %v2267_v52 = vpop.permute.xlu2 %2266  ;;  %p2353_p3 = pnand %p2352_p2, %p2348_p13 }
 0x329   : > { %v2269_v56 = vunpack.i.h.bf16 %v2267_v52  ;;  %v2268_v4 = vunpack.i.l.bf16 %v2267_v52 }
 0x32b   : > { %v1627_v0 = vsel %vm1238_vm7, %v1435_v28, %v2269_v56  ;;  %v1626_v20 = vsel %vm1238_vm7, %v1434_v22, %v2268_v4 }
 0x330   : > { %v2257_v10 = vpop.permute.xlu0 %2256 }
 0x331   : > { %v2259_v61 = vunpack.i.h.bf16 %v2257_v10  ;;  %v2258_v2 = vunpack.i.l.bf16 %v2257_v10 }
 0x333   : > { %v1624_v31 = vsel %vm1238_vm7, %v1432_v43, %v2258_v2  ;;  %v1625_v62 = vsel %vm1238_vm7, %v1433_v1, %v2259_v61 }
 0x33d   : > { %v2262_v33 = vpop.permute.xlu1 %2261 }
 0x33e   : > { %v2264_v15 = vunpack.i.h.bf16 %v2262_v33  ;;  %v2263_v3 = vunpack.i.l.bf16 %v2262_v33  ;;  %v1438_v33 = vmul.f32 %v3316_v63, %v2898_v12  ;;  %v1441_v63 = vmul.f32 %v3347_v46, %v2906_v16 }
 0x340   : > { %v1640_v44 = vsel %vm1255_vm6, %v1624_v31, %v2263_v3  ;;  %v1641_v36 = vsel %vm1255_vm6, %v1625_v62, %v2264_v15  ;;  %v1439_v15 = vmul.f32 %v3326_v30, %v2783_v60  ;;  %v1440_v60 = vmul.f32 %v3334_v35, %v2919_v54 }
 0x341   : > { %v1655_v49 = vpack.c.bf16 %v1641_v36, %v1640_v44  ;;  %v1443_v54 = vmul.f32 %v3371_v57, %v2925_v26  ;;  %v1444_v26 = vmul.f32 %v3379_v5, %v2935_v29  ;;  %v1445_v57 = vmul.f32 %v3389_v38, %v2955_v45  ;;  %v2327_v29 = vld [vmem:[%s3550_s9] ss:$0 sm:$0xff]  ;;  %v3579_v38 = vld [vmem:[#allocation7_spill] sm:$0xff] }
 0x343   : > { %1975 = vmatmul.msk.bf16.gmra.mxu2 %vm1308_vm8, %v1655_v49 }
 0x345   : > { %v2282_v18 = vpop.permute.xlu2 %2281 }
 0x346   : > { %v2284_v13 = vunpack.i.h.bf16 %v2282_v18  ;;  %v2283_v10 = vunpack.i.l.bf16 %v2282_v18 }
 0x34d   : > { %v2272_v53 = vpop.permute.xlu0 %2271 }
 0x34e   : > { %v2274_v19 = vunpack.i.h.bf16 %v2272_v53  ;;  %v2273_v34 = vunpack.i.l.bf16 %v2272_v53 }
 0x350   : > { %v2277_v55 = vpop.permute.xlu1 %2276  ;;  %v1642_v32 = vsel %vm1255_vm6, %v1626_v20, %v2273_v34  ;;  %v1643_v25 = vsel %vm1255_vm6, %v1627_v0, %v2274_v19  ;;  %v1442_v20 = vmul.f32 %v3361_v47, %v2917_v48 }
 0x351   : > { %v2279_v41 = vunpack.i.h.bf16 %v2277_v55  ;;  %v2278_v7 = vunpack.i.l.bf16 %v2277_v55  ;;  %v1656_v37 = vpack.c.bf16 %v1643_v25, %v1642_v32 }
 0x353   : > { %v1629_v61 = vsel %vm1238_vm7, %v1437_v42, %v2279_v41  ;;  %v1628_v2 = vsel %vm1238_vm7, %v1436_v23, %v2278_v7  ;;  %1976 = vmatmul.msk.bf16.gmra.mxu2 %vm1308_vm8, %v1656_v37 }
 0x354   : > { %v1644_v21 = vsel %vm1255_vm6, %v1628_v2, %v2283_v10  ;;  %v1645_v8 = vsel %vm1255_vm6, %v1629_v61, %v2284_v13 }
 0x355   : > { %v1657_v43 = vpack.c.bf16 %v1645_v8, %v1644_v21 }
 0x358   : > { %v2297_v4 = vpop.permute.xlu2 %2296 }
 0x359   : > { %v2299_v22 = vunpack.i.h.bf16 %v2297_v4  ;;  %v2298_v12 = vunpack.i.l.bf16 %v2297_v4 }
 0x35b   : > { %v1633_v19 = vsel %vm1238_vm7, %v1441_v63, %v2299_v22  ;;  %v1632_v34 = vsel %vm1238_vm7, %v1440_v60, %v2298_v12  ;;  %v3581_v60 = vld [vmem:[#allocation9_spill] sm:$0xff] }
 0x360   : > { %v2287_v1 = vpop.permute.xlu0 %2286 }
 0x361   : > { %v2289_v6 = vunpack.i.h.bf16 %v2287_v1  ;;  %v2288_v17 = vunpack.i.l.bf16 %v2287_v1 }
 0x363   : > { %1977 = vmatmul.msk.bf16.gmra.mxu2 %vm1308_vm8, %v1657_v43  ;;  %v1631_v44 = vsel %vm1238_vm7, %v1439_v15, %v2289_v6  ;;  %v1630_v36 = vsel %vm1238_vm7, %v1438_v33, %v2288_v17 }
 0x36d   : > { %v2292_v3 = vpop.permute.xlu1 %2291 }
 0x36e   : > { %v2294_v31 = vunpack.i.h.bf16 %v2292_v3  ;;  %v2293_v62 = vunpack.i.l.bf16 %v2292_v3 }
 0x370   : > { %v1646_v49 = vsel %vm1255_vm6, %v1630_v36, %v2293_v62  ;;  %v1647_v52 = vsel %vm1255_vm6, %v1631_v44, %v2294_v31  ;;  %v3580_v31 = vld [vmem:[#allocation8_spill] sm:$0xff] }
 0x371   : > { %v1658_v56 = vpack.c.bf16 %v1647_v52, %v1646_v49 }
 0x373   : > { %1978 = vmatmul.msk.bf16.gmra.mxu2 %vm1308_vm8, %v1658_v56 }
 0x375   : > { %v2312_v0 = vpop.permute.xlu2 %2311 }
 0x376   : > { %v2314_v32 = vunpack.i.h.bf16 %v2312_v0  ;;  %v2313_v25 = vunpack.i.l.bf16 %v2312_v0 }
 0x37d   : > { %v2302_v30 = vpop.permute.xlu0 %2301 }
 0x37e   : > { %v2304_v28 = vunpack.i.h.bf16 %v2302_v30  ;;  %v2303_v53 = vunpack.i.l.bf16 %v2302_v30 }
 0x380   : > { %v2307_v18 = vpop.permute.xlu1 %2306  ;;  %v1648_v23 = vsel %vm1255_vm6, %v1632_v34, %v2303_v53  ;;  %v1649_v55 = vsel %vm1255_vm6, %v1633_v19, %v2304_v28 }
 0x381   : > { %v2309_v16 = vunpack.i.h.bf16 %v2307_v18  ;;  %v2308_v35 = vunpack.i.l.bf16 %v2307_v18  ;;  %v1659_v46 = vpack.c.bf16 %v1649_v55, %v1648_v23 }
 0x383   : > { %v1635_v42 = vsel %vm1238_vm7, %v1443_v54, %v2309_v16  ;;  %v1634_v41 = vsel %vm1238_vm7, %v1442_v20, %v2308_v35  ;;  %1979 = vmatmul.msk.bf16.gmra.mxu2 %vm1308_vm8, %v1659_v46 }
 0x384   : > { %v1650_v48 = vsel %vm1255_vm6, %v1634_v41, %v2313_v25  ;;  %v1651_v47 = vsel %vm1255_vm6, %v1635_v42, %v2314_v32 }
 0x385   : > { %v1660_v7 = vpack.c.bf16 %v1651_v47, %v1650_v48 }
 0x390   : > { %v2317_v37 = vpop.permute.xlu0 %2316 }
 0x391   : > { %v2319_v13 = vunpack.i.h.bf16 %v2317_v37  ;;  %v2318_v10 = vunpack.i.l.bf16 %v2317_v37 }
 0x393   : > { %1980 = vmatmul.msk.bf16.gmra.mxu2 %vm1308_vm8, %v1660_v7  ;;  %v1637_v8 = vsel %vm1238_vm7, %v1445_v57, %v2319_v13  ;;  %v1636_v43 = vsel %vm1238_vm7, %v1444_v26, %v2318_v10 }
 0x395   : > { %v2322_v61 = vpop.permute.xlu1 %2321 }
 0x396   : > { %v2324_v2 = vunpack.i.h.bf16 %v2322_v61  ;;  %v2323_v21 = vunpack.i.l.bf16 %v2322_v61 }
 0x398   : > { %v1652_v1 = vsel %vm1255_vm6, %v1636_v43, %v2323_v21  ;;  %v1653_v6 = vsel %vm1255_vm6, %v1637_v8, %v2324_v2 }
 0x399   : > { %v1661_v17 = vpack.c.bf16 %v1653_v6, %v1652_v1 }
 0x3a3   : > { %1981 = vmatmul.msk.bf16.gmra.mxu2 %vm1308_vm8, %v1661_v17 }
 0x3aa   : > { %v1723_v33 = vpop.f32.mrf.mxu2 }
 0x3ab   : > { %v1724_v45 = vadd.f32 %v2327_v29, %v1723_v33 }
 0x3ad   : > { %v1763_v15 = vadd.f32 %v1724_v45, %v3579_v38 }
 0x3af   : > { %v1779_v44 = vmax.f32 %v1763_v15, 0.0 }
 0x3b2   : > { %v1725_v5 = vpop.f32.mrf.mxu2 }
 0x3b3   : > { %v1726_v3 = vadd.f32 %v2327_v29, %v1725_v5 }
 0x3b5   : > { %v1764_v62 = vadd.f32 %v1726_v3, %v3580_v31 }
 0x3b7   : > { %v1780_v36 = vmax.f32 %v1764_v62, 0.0 }
 0x3b9   : > { %v3481_v49 = vpack.c.bf16 %v1780_v36, %v1779_v44 }
 0x3c6   : > { %v1728_v52 = vpop.f32.mrf.mxu2 }
 0x3c7   : > { %v1729_v56 = vadd.f32 %v2327_v29, %v1728_v52 }
 0x3c9   : > { %v1765_v22 = vadd.f32 %v1729_v56, %v2983_v11 }
 0x3cb   : > { %v1781_v30 = vmax.f32 %v1765_v22, 0.0 }
 0x3ce   : > { %v1730_v4 = vpop.f32.mrf.mxu2 }
 0x3cf   : > { %v1731_v12 = vadd.f32 %v2327_v29, %v1730_v4 }
 0x3d1   : > { %v1766_v63 = vadd.f32 %v1731_v12, %v3581_v60 }
 0x3d3   : > { %v1782_v28 = vmax.f32 %v1766_v63, 0.0 }
 0x3d5   : > { %v1797_v53 = vpack.c.bf16 %v1782_v28, %v1781_v30 }
 0x3d6   : > { %v1733_v19 = vpop.f32.mrf.mxu2 }
 0x3d7   : > { %v1734_v34 = vadd.f32 %v2327_v29, %v1733_v19 }
 0x3d9   : > { %v1767_v20 = vadd.f32 %v1734_v34, %v3003_v58 }
 0x3db   : > { %v1783_v55 = vmax.f32 %v1767_v20, 0.0 }
 0x3de   : > { %v1735_v0 = vpop.f32.mrf.mxu2 }
 0x3df   : > { %v1736_v18 = vadd.f32 %v2327_v29, %v1735_v0 }
 0x3e1   : > { %v1768_v23 = vadd.f32 %v1736_v18, %v3013_v59 }
 0x3e3   : > { %v1784_v54 = vmax.f32 %v1768_v23, 0.0 }
 0x3e5   : > { %v1798_v16 = vpack.c.bf16 %v1784_v54, %v1783_v55 }
 0x3e6   : > { %v1738_v35 = vpop.f32.mrf.mxu2 }
 0x3e7   : > { %v1739_v46 = vadd.f32 %v2327_v29, %v1738_v35 }
 0x3e9   : > { %v1769_v32 = vadd.f32 %v1739_v46, %v3021_v51 }
 0x3eb   : > { %v1785_v41 = vmax.f32 %v1769_v32, 0.0 }
 0x3ee   : > { %v1740_v11 = vpop.f32.mrf.mxu2 }
 0x3ef   : > { %v1741_v25 = vadd.f32 %v2327_v29, %v1740_v11 }
 0x3f1   : > { %v1770_v42 = vadd.f32 %v1741_v25, %v3031_v9 }
 0x3f3   : > { %v1786_v48 = vmax.f32 %v1770_v42, 0.0 }
 0x3f5   : > { %v1799_v47 = vpack.c.bf16 %v1786_v48, %v1785_v41 }
 0x3f6   : > { %v1743_v7 = vpop.f32.mrf.mxu2 }
 0x3f7   : > { %v1744_v31 = vadd.f32 %v2327_v29, %v1743_v7 }
 0x3fe   : > { %v1745_v37 = vpop.f32.mrf.mxu2 }
 0x3ff   : > { %v1746_v5 = vadd.f32 %v2327_v29, %v1745_v37 }
 0x406   : > { %v1748_v58 = vpop.f32.mrf.mxu2 }
 0x407   : > { %v1749_v6 = vadd.f32 %v2327_v29, %v1748_v58 }
 0x409   : > { %v1773_v62 = vadd.f32 %v1749_v6, %v3057_v24  ;;  %v1998_v24 = vld [vmem:[%s3551_s10] sm:$0xff] }
 0x40b   : > { %v1789_v4 = vmax.f32 %v1773_v62, 0.0 }
 0x40e   : > { %v1750_v13 = vpop.f32.mrf.mxu2 }
 0x40f   : > { %v1751_v43 = vadd.f32 %v2327_v29, %v1750_v13 }
 0x411   : > { %v1774_v38 = vadd.f32 %v1751_v43, %v3067_v40 }
 0x416   : > { %v1753_v10 = vpop.f32.mrf.mxu2 }
 0x417   : > { %v1754_v21 = vadd.f32 %v2327_v29, %v1753_v10 }
 0x419   : > { %v1775_v17 = vadd.f32 %v1754_v21, %v3075_v27 }
 0x41b   : > { %v1791_v44 = vmax.f32 %v1775_v17, 0.0 }
 0x41e   : > { %v1755_v59 = vpop.f32.mrf.mxu2 }
 0x41f   : > { %v1756_v61 = vadd.f32 %v2327_v29, %v1755_v59 }
 0x421   : > { %v1776_v9 = vadd.f32 %v1756_v61, %v3091_v39  ;;  %v1790_v39 = vmax.f32 %v1774_v38, 0.0 }
 0x423   : > { %v1792_v15 = vmax.f32 %v1776_v9, 0.0  ;;  %v1801_v22 = vpack.c.bf16 %v1790_v39, %v1789_v4 }
 0x425   : > { %v1802_v52 = vpack.c.bf16 %v1792_v15, %v1791_v44 }
 0x426   : > { %v1758_v26 = vpop.f32.mrf.mxu2 }
 0x427   : > { %v1759_v57 = vadd.f32 %v2327_v29, %v1758_v26 }
 0x429   : > { %v1777_v51 = vadd.f32 %v1759_v57, %v3102_v14  ;;  %v3582_v14 = vld [vmem:[#allocation11_spill] sm:$0xff] }
 0x42a   : > { %v1772_v36 = vadd.f32 %v1746_v5, %v3582_v14 }
 0x42b   : > { %v1793_v33 = vmax.f32 %v1777_v51, 0.0 }
 0x42c   : > { %v1788_v27 = vmax.f32 %v1772_v36, 0.0 }
 0x42e   : > { %v1760_v2 = vpop.f32.mrf.mxu2 }
 0x42f   : > { %v1761_v8 = vadd.f32 %v2327_v29, %v1760_v2  ;;  %v1795_v29 = vld [vmem:[%s3544_s3] sm:$0xf] }
 0x431   : > { %v1778_v1 = vadd.f32 %v1761_v8, %v3112_v50  ;;  %v3583_v50 = vld [vmem:[#allocation10_spill] sm:$0xff] }
 0x432   : > { %v1771_v56 = vadd.f32 %v1744_v31, %v3583_v50 }
 0x433   : > { %v1794_v45 = vmax.f32 %v1778_v1, 0.0 }
 0x434   : > { %v1787_v12 = vmax.f32 %v1771_v56, 0.0 }
 0x435   : > { %v1803_v3 = vpack.c.bf16 %v1794_v45, %v1793_v33 }
 0x436   : > { %v1800_v40 = vpack.c.bf16 %v1788_v27, %v1787_v12 }
 0x437   : > { %1804 = vmatpush.bf16.msra.mxu3 %v1803_v3 }
 0x43b   : > { %1805 = vmatpush.bf16.msra.mxu3 %v1802_v52 }
 0x43f   : > { %1806 = vmatpush.bf16.msra.mxu3 %v1801_v22 }
 0x443   : > { %1807 = vmatpush.bf16.msra.mxu3 %v1800_v40 }
 0x447   : > { %1808 = vmatpush.bf16.msra.mxu3 %v1799_v47 }
 0x44b   : > { %1809 = vmatpush.bf16.msra.mxu3 %v1798_v16 }
 0x44f   : > { %1810 = vmatpush.bf16.msra.mxu3 %v1797_v53 }
 0x453   : > { %1811 = vmatpush.bf16.msra.mxu3 %v3481_v49  ;;  %v2328_v49 = vld [vmem:[%s3552_s11] ss:$0 sm:$0xff] }
 0x456   : > { %1812 = vmatmul.bf16.vlgmr.msra.gmra.mxu3 %v1795_v29 }
 0x457   : > { %1841 = vmatpush.bf16.msrb.mxu3 %v1998_v24 }
 0x4d9   : > { %v1813_v60 = vpop.f32.mrf.mxu3 }
 0x4da   : > { %v1817_v63 = vmul.f32 0.0625, %v1813_v60 }
 0x4dc   : > { %v1818_v30 = vpack.c.bf16 %v1817_v63, %v1817_v63 }
 0x4de   : > { %1986 = vmatmul.msk.bf16.vlgmr.msrb.gmra.mxu3 %vm1238_vm7, %v1818_v30 }
 0x4e1   : > { %v1815_v28 = vpop.f32.mrf.mxu3 }
 0x561   : > { %v1843_v53 = vpop.f32.mrf.mxu3 }
 0x562   : > { %v1844_v19 = vadd.f32 %v2328_v49, %v1843_v53 }
 0x564   : > { %1847 = vst.msk [vmem:[%s407_s16] sm:$0xff] %vm1255_vm6, %v1844_v19 }
 0x565   : > { %2356 = shalt.err (!%p2353_p3)
}
 0x566   : > { %2038 = dma.vmem_to_hbm [thread:$0]  (%p2501_p5), %s1862_s23, 128, %s1864_s30, %s1849_s25  }
 0x569   : > { %v1845_v34 = vpop.f32.mrf.mxu3 }
 0x56a PF: > { %p2044_p4 = scmp.ge.s32.totalorder %s2391_s24, 2  ;;  %s1875_s17 = sand.u32 1, %s2379_s21  }
 0x56b   : > { %s1876_s15 = scalar_lea.sflag [#allocation3], %s1875_s17 }
 0x56c   : > { %p2041_p7 = pnand %p2044_p4, %p2505_p6 }
 0x56e   : > { %p2042_p8 = pneg %p2041_p7 }
 0x570   : > { %2374 = dma.done.wait (%p2042_p8), %s1876_s15, 128  }
 0x571   : > { %2376 = vsyncadd (%p2042_p8), %s1876_s15, 4294967168  ;;  %s3584_s0 = sld [smem:[#allocation5_spill]]  ;;  %p22_p9 = scmp.ge.s32.totalorder %s2488_s27, 4  }
 0x572   : > { %s3585_s23 = sld [smem:[#allocation6_spill]]  ;;  %s3586_s21 = smov %s2383_s22 }
 0x573   : > { %s3588_s24 = smov %s2488_s27  ;;  %24 = sbr.rel (!%p22_p9) target bundleno = 6 (0x6), region = 103 }
 0x577   : > { %s3587_s22 = smov %s3584_s0 }
 0x578   :  { %1882 = vsyncpa [#allocation3], 1 }
 0x579   :  { %1884 = vsyncpa [#allocation3 + $0x1], 1 }

</bundles_post_ra>
